<compile_context>
chip_gen: v6e
topology: v6e:2x2x1
jax: 0.10.0
libtpu: 0.0.40
codegen_flags: <defaults>
</compile_context>

<pallas_src>
import math

import jax
import jax.numpy as jnp
from jax.experimental import pallas as pl
from jax.experimental.pallas import tpu as pltpu


def lstm_kernel(x_ref, wih1_ref, whh1_ref, b1_ref,
                wih2_ref, whh2_ref, b2_ref, wfc_ref, bfc_ref,
                out_ref,
                h1, c1, h2, c2, hseq):
    t = pl.program_id(0)

    # Zero the recurrent state at the first time step.
    @pl.when(t == 0)
    def _init():
        h1[...] = jnp.zeros_like(h1)
        c1[...] = jnp.zeros_like(c1)
        h2[...] = jnp.zeros_like(h2)
        c2[...] = jnp.zeros_like(c2)

    def lstm_cell(x_in, h_prev, c_prev, wih_ref, whh_ref, b_ref):
        # Weights are pre-transposed to [in, H] and stacked per gate (i, f, g, o),
        # so the contraction is on the existing last axis (no in-kernel transpose).
        def gate(g):
            return (jnp.dot(x_in, wih_ref[g], preferred_element_type=jnp.float32)
                    + jnp.dot(h_prev, whh_ref[g], preferred_element_type=jnp.float32)
                    + b_ref[g])

        i_t = jax.nn.sigmoid(gate(0))
        f_t = jax.nn.sigmoid(gate(1))
        g_t = jnp.tanh(gate(2))
        o_t = jax.nn.sigmoid(gate(3))
        c_new = f_t * c_prev + i_t * g_t
        h_new = o_t * jnp.tanh(c_new)
        return h_new, c_new

    x_t = x_ref[0]                                             # [B, D]

    h1_new, c1_new = lstm_cell(x_t, h1[...], c1[...], wih1_ref, whh1_ref, b1_ref)
    h1[...] = h1_new
    c1[...] = c1_new

    h2_new, c2_new = lstm_cell(h1_new, h2[...], c2[...], wih2_ref, whh2_ref, b2_ref)
    h2[...] = h2_new
    c2[...] = c2_new

    # `lstm_out[-1, :]` (batch_first) = last batch element's hidden sequence.
    nb = h2_new.shape[0]
    hseq[pl.ds(t, 1), :] = h2_new[nb - 1:nb, :]

    # Final projection once, at the last time step: one [T, H] @ [H, Dout] matmul.
    @pl.when(t == pl.num_programs(0) - 1)
    def _finalize():
        y = jnp.dot(hseq[...], wfc_ref[...],
                    preferred_element_type=jnp.float32) + bfc_ref[...]
        out_ref[...] = y.astype(out_ref.dtype)


def _prep_gate_weights(w_ih, w_hh, b_ih, b_hh, hidden):
    """PyTorch layout [4H, in] / [4H, H] / [4H] (gate order i, f, g, o) ->
    per-gate stacked, pre-transposed [4, in, H] / [4, H, H] / [4, 1, H]."""
    w_ih_s = jnp.transpose(w_ih.reshape(4, hidden, -1), (0, 2, 1))
    w_hh_s = jnp.transpose(w_hh.reshape(4, hidden, -1), (0, 2, 1))
    b_s = (b_ih + b_hh).reshape(4, 1, hidden)
    return w_ih_s, w_hh_s, b_s


def two_layer_lstm(x, params):
    """x: [B, T, D] f32, PyTorch-layout params -> [T, D] f32 (= fc(lstm_out[-1, :]))."""
    B, T, D = x.shape
    H = params["w_hh_l0"].shape[1]
    Dout = params["w_fc"].shape[0]

    wih1, whh1, b1 = _prep_gate_weights(params["w_ih_l0"], params["w_hh_l0"],
                                        params["b_ih_l0"], params["b_hh_l0"], H)
    wih2, whh2, b2 = _prep_gate_weights(params["w_ih_l1"], params["w_hh_l1"],
                                        params["b_ih_l1"], params["b_hh_l1"], H)
    wfc = params["w_fc"].T                       # [H, Dout]  (pre-transposed once)
    bfc = params["b_fc"].reshape(1, Dout)

    x_tm = jnp.transpose(x, (1, 0, 2))           # time-major [T, B, D]

    def resident(shape):
        # Full block, same index every grid step -> stays in VMEM across the time loop.
        zeros = (0,) * len(shape)
        return pl.BlockSpec(shape, lambda t, _z=zeros: _z)

    grid_spec = pltpu.PrefetchScalarGridSpec(
        num_scalar_prefetch=0,
        grid=(T,),
        in_specs=[
            pl.BlockSpec((1, B, D), lambda t: (t, 0, 0)),   # x_t streamed per step
            resident((4, D, H)),                            # layer-1 W_ih (per gate)
            resident((4, H, H)),                            # layer-1 W_hh
            resident((4, 1, H)),                            # layer-1 bias (ih+hh)
            resident((4, H, H)),                            # layer-2 W_ih
            resident((4, H, H)),                            # layer-2 W_hh
            resident((4, 1, H)),                            # layer-2 bias
            resident((H, Dout)),                            # fc weight [H, Dout]
            resident((1, Dout)),                            # fc bias
        ],
        out_specs=pl.BlockSpec((T, Dout), lambda t: (0, 0)),  # resident; written once
        scratch_shapes=[
            pltpu.VMEM((B, H), jnp.float32),   # h1
            pltpu.VMEM((B, H), jnp.float32),   # c1
            pltpu.VMEM((B, H), jnp.float32),   # h2
            pltpu.VMEM((B, H), jnp.float32),   # c2
            pltpu.VMEM((T, H), jnp.float32),   # hidden sequence of last batch element
        ],
    )

    return pl.pallas_call(
        lstm_kernel,
        out_shape=jax.ShapeDtypeStruct((T, Dout), jnp.float32),
        grid_spec=grid_spec,
        compiler_params=pltpu.CompilerParams(
            # Time axis is a true recurrence -> sequential.
            dimension_semantics=("arbitrary",),
        ),
    )(x_tm, wih1, whh1, b1, wih2, whh2, b2, wfc, bfc)


def init_params(key, input_size):
    """Deterministic init mimicking nn.LSTM / nn.Linear defaults (uniform +-1/sqrt(H))."""
    H = 3 * input_size
    ks = jax.random.split(key, 10)
    lim = 1.0 / math.sqrt(H)
    u = lambda kk, shape: jax.random.uniform(kk, shape, jnp.float32, -lim, lim)
    return {
        "w_ih_l0": u(ks[0], (4 * H, input_size)),
        "w_hh_l0": u(ks[1], (4 * H, H)),
        "b_ih_l0": u(ks[2], (4 * H,)),
        "b_hh_l0": u(ks[3], (4 * H,)),
        "w_ih_l1": u(ks[4], (4 * H, H)),
        "w_hh_l1": u(ks[5], (4 * H, H)),
        "b_ih_l1": u(ks[6], (4 * H,)),
        "b_hh_l1": u(ks[7], (4 * H,)),
        "w_fc":    u(ks[8], (input_size, H)),
        "b_fc":    u(ks[9], (input_size,)),
    }


def lstm_reference(x, params):
    """Pure-JAX reference replicating torch.nn.LSTM(num_layers=2, batch_first=True)
    followed by fc(lstm_out[-1, :]) exactly as written in the PyTorch module."""
    xt = jnp.transpose(x, (1, 0, 2))  # [T, B, D]

    def run_layer(inputs, w_ih, w_hh, b_ih, b_hh):
        H = w_hh.shape[1]

        def step(carry, x_t):
            h, c = carry
            gates = (x_t @ w_ih.T + b_ih) + (h @ w_hh.T + b_hh)
            i, f, g, o = jnp.split(gates, 4, axis=-1)
            i = jax.nn.sigmoid(i)
            f = jax.nn.sigmoid(f)
            g = jnp.tanh(g)
            o = jax.nn.sigmoid(o)
            c = f * c + i * g
            h = o * jnp.tanh(c)
            return (h, c), h

        h0 = jnp.zeros((inputs.shape[1], H), jnp.float32)
        c0 = jnp.zeros((inputs.shape[1], H), jnp.float32)
        _, hs = jax.lax.scan(step, (h0, c0), inputs)
        return hs  # [T, B, H]

    h1s = run_layer(xt, params["w_ih_l0"], params["w_hh_l0"],
                    params["b_ih_l0"], params["b_hh_l0"])
    h2s = run_layer(h1s, params["w_ih_l1"], params["w_hh_l1"],
                    params["b_ih_l1"], params["b_hh_l1"])
    lstm_out = jnp.transpose(h2s, (1, 0, 2))          # [B, T, H], batch_first
    last = lstm_out[-1]                               # [T, H]  (last batch element)
    return last @ params["w_fc"].T + params["b_fc"]   # [T, D]


if __name__ == "__main__":
    key = jax.random.PRNGKey(0)
    kx, kp = jax.random.split(key)

    input_size = 16          # D; hidden = 3 * D = 48
    batch, seq = 4, 8

    x = jax.random.normal(kx, (batch, seq, input_size), jnp.float32)
    params = init_params(kp, input_size)

    out = two_layer_lstm(x, params)
    out = jax.block_until_ready(out)

    with jax.default_matmul_precision("highest"):
        ref = lstm_reference(x, params)

    assert out.shape == (seq, input_size)
    assert jnp.allclose(out, ref, atol=1e-4, rtol=1e-4)

    print("KERNEL_OK")
</pallas_src>

<mosaic_0001>
module attributes {stable_mosaic.version = 11 : i64} {
  func.func @lstm_kernel(%arg0: i32, %arg1: memref<1x4x16xf32, #tpu.memory_space<vmem>>, %arg2: memref<4x16x48xf32, #tpu.memory_space<vmem>>, %arg3: memref<4x48x48xf32, #tpu.memory_space<vmem>>, %arg4: memref<4x1x48xf32, #tpu.memory_space<vmem>>, %arg5: memref<4x48x48xf32, #tpu.memory_space<vmem>>, %arg6: memref<4x48x48xf32, #tpu.memory_space<vmem>>, %arg7: memref<4x1x48xf32, #tpu.memory_space<vmem>>, %arg8: memref<48x16xf32, #tpu.memory_space<vmem>>, %arg9: memref<1x16xf32, #tpu.memory_space<vmem>>, %arg10: memref<8x16xf32, #tpu.memory_space<vmem>>, %arg11: memref<4x48xf32, #tpu.memory_space<vmem>>, %arg12: memref<4x48xf32, #tpu.memory_space<vmem>>, %arg13: memref<4x48xf32, #tpu.memory_space<vmem>>, %arg14: memref<4x48xf32, #tpu.memory_space<vmem>>, %arg15: memref<8x48xf32, #tpu.memory_space<vmem>>) attributes {dimension_semantics = [#tpu.dimension_semantics<arbitrary>], iteration_bounds = array<i64: 8>, scalar_prefetch = 0 : i64, scratch_operands = 5 : i64, tpu.core_type = #tpu.core_type<tc>, window_params = [{transform_indices = @transform_0, window_bounds = array<i64: 1, 4, 16>}, {pipeline_mode = #tpu.pipeline_mode<synchronous>, transform_indices = @transform_1, window_bounds = array<i64: 4, 16, 48>}, {pipeline_mode = #tpu.pipeline_mode<synchronous>, transform_indices = @transform_2, window_bounds = array<i64: 4, 48, 48>}, {pipeline_mode = #tpu.pipeline_mode<synchronous>, transform_indices = @transform_3, window_bounds = array<i64: 4, 1, 48>}, {pipeline_mode = #tpu.pipeline_mode<synchronous>, transform_indices = @transform_4, window_bounds = array<i64: 4, 48, 48>}, {pipeline_mode = #tpu.pipeline_mode<synchronous>, transform_indices = @transform_5, window_bounds = array<i64: 4, 48, 48>}, {pipeline_mode = #tpu.pipeline_mode<synchronous>, transform_indices = @transform_6, window_bounds = array<i64: 4, 1, 48>}, {pipeline_mode = #tpu.pipeline_mode<synchronous>, transform_indices = @transform_7, window_bounds = array<i64: 48, 16>}, {pipeline_mode = #tpu.pipeline_mode<synchronous>, transform_indices = @transform_8, window_bounds = array<i64: 1, 16>}, {pipeline_mode = #tpu.pipeline_mode<synchronous>, transform_indices = @transform_9, window_bounds = array<i64: 8, 16>}]} {
    %c0_i32 = arith.constant 0 : i32
    %0 = arith.cmpi eq, %arg0, %c0_i32 : i32
    %1 = arith.extui %0 : i1 to i32
    %c0_i32_0 = arith.constant 0 : i32
    %2 = arith.cmpi ne, %1, %c0_i32_0 : i32
    scf.if %2 {
      %cst_111 = arith.constant 0.000000e+00 : f32
      %149 = vector.broadcast %cst_111 : f32 to vector<4x48xf32>
      %c0_112 = arith.constant 0 : index
      %c0_113 = arith.constant 0 : index
      %150 = vector.load %arg11[%c0_112, %c0_113] : memref<4x48xf32, #tpu.memory_space<vmem>>, vector<4x48xf32>
      tpu.vector_store %arg11[%c0_112, %c0_113], %149 {strides = array<i32>} : memref<4x48xf32, #tpu.memory_space<vmem>>, vector<4x48xf32>,
      %cst_114 = arith.constant 0.000000e+00 : f32
      %151 = vector.broadcast %cst_114 : f32 to vector<4x48xf32>
      %c0_115 = arith.constant 0 : index
      %c0_116 = arith.constant 0 : index
      %152 = vector.load %arg12[%c0_115, %c0_116] : memref<4x48xf32, #tpu.memory_space<vmem>>, vector<4x48xf32>
      tpu.vector_store %arg12[%c0_115, %c0_116], %151 {strides = array<i32>} : memref<4x48xf32, #tpu.memory_space<vmem>>, vector<4x48xf32>,
      %cst_117 = arith.constant 0.000000e+00 : f32
      %153 = vector.broadcast %cst_117 : f32 to vector<4x48xf32>
      %c0_118 = arith.constant 0 : index
      %c0_119 = arith.constant 0 : index
      %154 = vector.load %arg13[%c0_118, %c0_119] : memref<4x48xf32, #tpu.memory_space<vmem>>, vector<4x48xf32>
      tpu.vector_store %arg13[%c0_118, %c0_119], %153 {strides = array<i32>} : memref<4x48xf32, #tpu.memory_space<vmem>>, vector<4x48xf32>,
      %cst_120 = arith.constant 0.000000e+00 : f32
      %155 = vector.broadcast %cst_120 : f32 to vector<4x48xf32>
      %c0_121 = arith.constant 0 : index
      %c0_122 = arith.constant 0 : index
      %156 = vector.load %arg14[%c0_121, %c0_122] : memref<4x48xf32, #tpu.memory_space<vmem>>, vector<4x48xf32>
      tpu.vector_store %arg14[%c0_121, %c0_122], %155 {strides = array<i32>} : memref<4x48xf32, #tpu.memory_space<vmem>>, vector<4x48xf32>,
    } else {
    }
    %c0 = arith.constant 0 : index
    %c0_1 = arith.constant 0 : index
    %c0_2 = arith.constant 0 : index
    %3 = vector.load %arg1[%c0, %c0_1, %c0_2] : memref<1x4x16xf32, #tpu.memory_space<vmem>>, vector<1x4x16xf32>
    %4 = vector.shape_cast %3 : vector<1x4x16xf32> to vector<4x16xf32>
    %c0_3 = arith.constant 0 : index
    %c0_4 = arith.constant 0 : index
    %5 = vector.load %arg11[%c0_3, %c0_4] : memref<4x48xf32, #tpu.memory_space<vmem>>, vector<4x48xf32>
    %c0_5 = arith.constant 0 : index
    %c0_6 = arith.constant 0 : index
    %6 = vector.load %arg12[%c0_5, %c0_6] : memref<4x48xf32, #tpu.memory_space<vmem>>, vector<4x48xf32>
    %c0_7 = arith.constant 0 : index
    %c0_8 = arith.constant 0 : index
    %c0_9 = arith.constant 0 : index
    %7 = vector.load %arg2[%c0_7, %c0_8, %c0_9] : memref<4x16x48xf32, #tpu.memory_space<vmem>>, vector<1x16x48xf32>
    %8 = vector.shape_cast %7 : vector<1x16x48xf32> to vector<16x48xf32>
    %cst = arith.constant dense<0.000000e+00> : vector<4x48xf32>
    %9 = tpu.matmul %4, %8, %cst {dimension_numbers = #tpu.dot_dimension_numbers<[1], [0], [0], [1], [0, 0, 1, 1], [], []>} : vector<4x16xf32>, vector<16x48xf32>, vector<4x48xf32> -> vector<4x48xf32>
    %c0_10 = arith.constant 0 : index
    %c0_11 = arith.constant 0 : index
    %c0_12 = arith.constant 0 : index
    %10 = vector.load %arg3[%c0_10, %c0_11, %c0_12] : memref<4x48x48xf32, #tpu.memory_space<vmem>>, vector<1x48x48xf32>
    %11 = vector.shape_cast %10 : vector<1x48x48xf32> to vector<48x48xf32>
    %cst_13 = arith.constant dense<0.000000e+00> : vector<4x48xf32>
    %12 = tpu.matmul %5, %11, %cst_13 {dimension_numbers = #tpu.dot_dimension_numbers<[1], [0], [0], [1], [0, 0, 1, 1], [], []>} : vector<4x48xf32>, vector<48x48xf32>, vector<4x48xf32> -> vector<4x48xf32>
    %13 = arith.addf %9, %12 : vector<4x48xf32>
    %c0_14 = arith.constant 0 : index
    %c0_15 = arith.constant 0 : index
    %c0_16 = arith.constant 0 : index
    %14 = vector.load %arg4[%c0_14, %c0_15, %c0_16] : memref<4x1x48xf32, #tpu.memory_space<vmem>>, vector<1x1x48xf32>
    %15 = vector.shape_cast %14 : vector<1x1x48xf32> to vector<1x48xf32>
    %16 = vector.broadcast %15 : vector<1x48xf32> to vector<4x48xf32>
    %17 = arith.addf %13, %16 : vector<4x48xf32>
    %18 = arith.negf %17 : vector<4x48xf32>
    %19 = math.exp %18 : vector<4x48xf32>
    %cst_17 = arith.constant 1.000000e+00 : f32
    %20 = vector.broadcast %cst_17 : f32 to vector<4x48xf32>
    %21 = arith.addf %20, %19 : vector<4x48xf32>
    %22 = arith.divf %20, %21 : vector<4x48xf32>
    %c1 = arith.constant 1 : index
    %c0_18 = arith.constant 0 : index
    %c0_19 = arith.constant 0 : index
    %23 = vector.load %arg2[%c1, %c0_18, %c0_19] : memref<4x16x48xf32, #tpu.memory_space<vmem>>, vector<1x16x48xf32>
    %24 = vector.shape_cast %23 : vector<1x16x48xf32> to vector<16x48xf32>
    %cst_20 = arith.constant dense<0.000000e+00> : vector<4x48xf32>
    %25 = tpu.matmul %4, %24, %cst_20 {dimension_numbers = #tpu.dot_dimension_numbers<[1], [0], [0], [1], [0, 0, 1, 1], [], []>} : vector<4x16xf32>, vector<16x48xf32>, vector<4x48xf32> -> vector<4x48xf32>
    %c1_21 = arith.constant 1 : index
    %c0_22 = arith.constant 0 : index
    %c0_23 = arith.constant 0 : index
    %26 = vector.load %arg3[%c1_21, %c0_22, %c0_23] : memref<4x48x48xf32, #tpu.memory_space<vmem>>, vector<1x48x48xf32>
    %27 = vector.shape_cast %26 : vector<1x48x48xf32> to vector<48x48xf32>
    %cst_24 = arith.constant dense<0.000000e+00> : vector<4x48xf32>
    %28 = tpu.matmul %5, %27, %cst_24 {dimension_numbers = #tpu.dot_dimension_numbers<[1], [0], [0], [1], [0, 0, 1, 1], [], []>} : vector<4x48xf32>, vector<48x48xf32>, vector<4x48xf32> -> vector<4x48xf32>
    %29 = arith.addf %25, %28 : vector<4x48xf32>
    %c1_25 = arith.constant 1 : index
    %c0_26 = arith.constant 0 : index
    %c0_27 = arith.constant 0 : index
    %30 = vector.load %arg4[%c1_25, %c0_26, %c0_27] : memref<4x1x48xf32, #tpu.memory_space<vmem>>, vector<1x1x48xf32>
    %31 = vector.shape_cast %30 : vector<1x1x48xf32> to vector<1x48xf32>
    %32 = vector.broadcast %31 : vector<1x48xf32> to vector<4x48xf32>
    %33 = arith.addf %29, %32 : vector<4x48xf32>
    %34 = arith.negf %33 : vector<4x48xf32>
    %35 = math.exp %34 : vector<4x48xf32>
    %cst_28 = arith.constant 1.000000e+00 : f32
    %36 = vector.broadcast %cst_28 : f32 to vector<4x48xf32>
    %37 = arith.addf %36, %35 : vector<4x48xf32>
    %38 = arith.divf %36, %37 : vector<4x48xf32>
    %c2 = arith.constant 2 : index
    %c0_29 = arith.constant 0 : index
    %c0_30 = arith.constant 0 : index
    %39 = vector.load %arg2[%c2, %c0_29, %c0_30] : memref<4x16x48xf32, #tpu.memory_space<vmem>>, vector<1x16x48xf32>
    %40 = vector.shape_cast %39 : vector<1x16x48xf32> to vector<16x48xf32>
    %cst_31 = arith.constant dense<0.000000e+00> : vector<4x48xf32>
    %41 = tpu.matmul %4, %40, %cst_31 {dimension_numbers = #tpu.dot_dimension_numbers<[1], [0], [0], [1], [0, 0, 1, 1], [], []>} : vector<4x16xf32>, vector<16x48xf32>, vector<4x48xf32> -> vector<4x48xf32>
    %c2_32 = arith.constant 2 : index
    %c0_33 = arith.constant 0 : index
    %c0_34 = arith.constant 0 : index
    %42 = vector.load %arg3[%c2_32, %c0_33, %c0_34] : memref<4x48x48xf32, #tpu.memory_space<vmem>>, vector<1x48x48xf32>
    %43 = vector.shape_cast %42 : vector<1x48x48xf32> to vector<48x48xf32>
    %cst_35 = arith.constant dense<0.000000e+00> : vector<4x48xf32>
    %44 = tpu.matmul %5, %43, %cst_35 {dimension_numbers = #tpu.dot_dimension_numbers<[1], [0], [0], [1], [0, 0, 1, 1], [], []>} : vector<4x48xf32>, vector<48x48xf32>, vector<4x48xf32> -> vector<4x48xf32>
    %45 = arith.addf %41, %44 : vector<4x48xf32>
    %c2_36 = arith.constant 2 : index
    %c0_37 = arith.constant 0 : index
    %c0_38 = arith.constant 0 : index
    %46 = vector.load %arg4[%c2_36, %c0_37, %c0_38] : memref<4x1x48xf32, #tpu.memory_space<vmem>>, vector<1x1x48xf32>
    %47 = vector.shape_cast %46 : vector<1x1x48xf32> to vector<1x48xf32>
    %48 = vector.broadcast %47 : vector<1x48xf32> to vector<4x48xf32>
    %49 = arith.addf %45, %48 : vector<4x48xf32>
    %50 = math.tanh %49 : vector<4x48xf32>
    %c3 = arith.constant 3 : index
    %c0_39 = arith.constant 0 : index
    %c0_40 = arith.constant 0 : index
    %51 = vector.load %arg2[%c3, %c0_39, %c0_40] : memref<4x16x48xf32, #tpu.memory_space<vmem>>, vector<1x16x48xf32>
    %52 = vector.shape_cast %51 : vector<1x16x48xf32> to vector<16x48xf32>
    %cst_41 = arith.constant dense<0.000000e+00> : vector<4x48xf32>
    %53 = tpu.matmul %4, %52, %cst_41 {dimension_numbers = #tpu.dot_dimension_numbers<[1], [0], [0], [1], [0, 0, 1, 1], [], []>} : vector<4x16xf32>, vector<16x48xf32>, vector<4x48xf32> -> vector<4x48xf32>
    %c3_42 = arith.constant 3 : index
    %c0_43 = arith.constant 0 : index
    %c0_44 = arith.constant 0 : index
    %54 = vector.load %arg3[%c3_42, %c0_43, %c0_44] : memref<4x48x48xf32, #tpu.memory_space<vmem>>, vector<1x48x48xf32>
    %55 = vector.shape_cast %54 : vector<1x48x48xf32> to vector<48x48xf32>
    %cst_45 = arith.constant dense<0.000000e+00> : vector<4x48xf32>
    %56 = tpu.matmul %5, %55, %cst_45 {dimension_numbers = #tpu.dot_dimension_numbers<[1], [0], [0], [1], [0, 0, 1, 1], [], []>} : vector<4x48xf32>, vector<48x48xf32>, vector<4x48xf32> -> vector<4x48xf32>
    %57 = arith.addf %53, %56 : vector<4x48xf32>
    %c3_46 = arith.constant 3 : index
    %c0_47 = arith.constant 0 : index
    %c0_48 = arith.constant 0 : index
    %58 = vector.load %arg4[%c3_46, %c0_47, %c0_48] : memref<4x1x48xf32, #tpu.memory_space<vmem>>, vector<1x1x48xf32>
    %59 = vector.shape_cast %58 : vector<1x1x48xf32> to vector<1x48xf32>
    %60 = vector.broadcast %59 : vector<1x48xf32> to vector<4x48xf32>
    %61 = arith.addf %57, %60 : vector<4x48xf32>
    %62 = arith.negf %61 : vector<4x48xf32>
    %63 = math.exp %62 : vector<4x48xf32>
    %cst_49 = arith.constant 1.000000e+00 : f32
    %64 = vector.broadcast %cst_49 : f32 to vector<4x48xf32>
    %65 = arith.addf %64, %63 : vector<4x48xf32>
    %66 = arith.divf %64, %65 : vector<4x48xf32>
    %67 = arith.mulf %38, %6 : vector<4x48xf32>
    %68 = arith.mulf %22, %50 : vector<4x48xf32>
    %69 = arith.addf %67, %68 : vector<4x48xf32>
    %70 = math.tanh %69 : vector<4x48xf32>
    %71 = arith.mulf %66, %70 : vector<4x48xf32>
    %c0_50 = arith.constant 0 : index
    %c0_51 = arith.constant 0 : index
    %72 = vector.load %arg11[%c0_50, %c0_51] : memref<4x48xf32, #tpu.memory_space<vmem>>, vector<4x48xf32>
    tpu.vector_store %arg11[%c0_50, %c0_51], %71 {strides = array<i32>} : memref<4x48xf32, #tpu.memory_space<vmem>>, vector<4x48xf32>,
    %c0_52 = arith.constant 0 : index
    %c0_53 = arith.constant 0 : index
    %73 = vector.load %arg12[%c0_52, %c0_53] : memref<4x48xf32, #tpu.memory_space<vmem>>, vector<4x48xf32>
    tpu.vector_store %arg12[%c0_52, %c0_53], %69 {strides = array<i32>} : memref<4x48xf32, #tpu.memory_space<vmem>>, vector<4x48xf32>,
    %c0_54 = arith.constant 0 : index
    %c0_55 = arith.constant 0 : index
    %74 = vector.load %arg13[%c0_54, %c0_55] : memref<4x48xf32, #tpu.memory_space<vmem>>, vector<4x48xf32>
    %c0_56 = arith.constant 0 : index
    %c0_57 = arith.constant 0 : index
    %75 = vector.load %arg14[%c0_56, %c0_57] : memref<4x48xf32, #tpu.memory_space<vmem>>, vector<4x48xf32>
    %c0_58 = arith.constant 0 : index
    %c0_59 = arith.constant 0 : index
    %c0_60 = arith.constant 0 : index
    %76 = vector.load %arg5[%c0_58, %c0_59, %c0_60] : memref<4x48x48xf32, #tpu.memory_space<vmem>>, vector<1x48x48xf32>
    %77 = vector.shape_cast %76 : vector<1x48x48xf32> to vector<48x48xf32>
    %cst_61 = arith.constant dense<0.000000e+00> : vector<4x48xf32>
    %78 = tpu.matmul %71, %77, %cst_61 {dimension_numbers = #tpu.dot_dimension_numbers<[1], [0], [0], [1], [0, 0, 1, 1], [], []>} : vector<4x48xf32>, vector<48x48xf32>, vector<4x48xf32> -> vector<4x48xf32>
    %c0_62 = arith.constant 0 : index
    %c0_63 = arith.constant 0 : index
    %c0_64 = arith.constant 0 : index
    %79 = vector.load %arg6[%c0_62, %c0_63, %c0_64] : memref<4x48x48xf32, #tpu.memory_space<vmem>>, vector<1x48x48xf32>
    %80 = vector.shape_cast %79 : vector<1x48x48xf32> to vector<48x48xf32>
    %cst_65 = arith.constant dense<0.000000e+00> : vector<4x48xf32>
    %81 = tpu.matmul %74, %80, %cst_65 {dimension_numbers = #tpu.dot_dimension_numbers<[1], [0], [0], [1], [0, 0, 1, 1], [], []>} : vector<4x48xf32>, vector<48x48xf32>, vector<4x48xf32> -> vector<4x48xf32>
    %82 = arith.addf %78, %81 : vector<4x48xf32>
    %c0_66 = arith.constant 0 : index
    %c0_67 = arith.constant 0 : index
    %c0_68 = arith.constant 0 : index
    %83 = vector.load %arg7[%c0_66, %c0_67, %c0_68] : memref<4x1x48xf32, #tpu.memory_space<vmem>>, vector<1x1x48xf32>
    %84 = vector.shape_cast %83 : vector<1x1x48xf32> to vector<1x48xf32>
    %85 = vector.broadcast %84 : vector<1x48xf32> to vector<4x48xf32>
    %86 = arith.addf %82, %85 : vector<4x48xf32>
    %87 = arith.negf %86 : vector<4x48xf32>
    %88 = math.exp %87 : vector<4x48xf32>
    %cst_69 = arith.constant 1.000000e+00 : f32
    %89 = vector.broadcast %cst_69 : f32 to vector<4x48xf32>
    %90 = arith.addf %89, %88 : vector<4x48xf32>
    %91 = arith.divf %89, %90 : vector<4x48xf32>
    %c1_70 = arith.constant 1 : index
    %c0_71 = arith.constant 0 : index
    %c0_72 = arith.constant 0 : index
    %92 = vector.load %arg5[%c1_70, %c0_71, %c0_72] : memref<4x48x48xf32, #tpu.memory_space<vmem>>, vector<1x48x48xf32>
    %93 = vector.shape_cast %92 : vector<1x48x48xf32> to vector<48x48xf32>
    %cst_73 = arith.constant dense<0.000000e+00> : vector<4x48xf32>
    %94 = tpu.matmul %71, %93, %cst_73 {dimension_numbers = #tpu.dot_dimension_numbers<[1], [0], [0], [1], [0, 0, 1, 1], [], []>} : vector<4x48xf32>, vector<48x48xf32>, vector<4x48xf32> -> vector<4x48xf32>
    %c1_74 = arith.constant 1 : index
    %c0_75 = arith.constant 0 : index
    %c0_76 = arith.constant 0 : index
    %95 = vector.load %arg6[%c1_74, %c0_75, %c0_76] : memref<4x48x48xf32, #tpu.memory_space<vmem>>, vector<1x48x48xf32>
    %96 = vector.shape_cast %95 : vector<1x48x48xf32> to vector<48x48xf32>
    %cst_77 = arith.constant dense<0.000000e+00> : vector<4x48xf32>
    %97 = tpu.matmul %74, %96, %cst_77 {dimension_numbers = #tpu.dot_dimension_numbers<[1], [0], [0], [1], [0, 0, 1, 1], [], []>} : vector<4x48xf32>, vector<48x48xf32>, vector<4x48xf32> -> vector<4x48xf32>
    %98 = arith.addf %94, %97 : vector<4x48xf32>
    %c1_78 = arith.constant 1 : index
    %c0_79 = arith.constant 0 : index
    %c0_80 = arith.constant 0 : index
    %99 = vector.load %arg7[%c1_78, %c0_79, %c0_80] : memref<4x1x48xf32, #tpu.memory_space<vmem>>, vector<1x1x48xf32>
    %100 = vector.shape_cast %99 : vector<1x1x48xf32> to vector<1x48xf32>
    %101 = vector.broadcast %100 : vector<1x48xf32> to vector<4x48xf32>
    %102 = arith.addf %98, %101 : vector<4x48xf32>
    %103 = arith.negf %102 : vector<4x48xf32>
    %104 = math.exp %103 : vector<4x48xf32>
    %cst_81 = arith.constant 1.000000e+00 : f32
    %105 = vector.broadcast %cst_81 : f32 to vector<4x48xf32>
    %106 = arith.addf %105, %104 : vector<4x48xf32>
    %107 = arith.divf %105, %106 : vector<4x48xf32>
    %c2_82 = arith.constant 2 : index
    %c0_83 = arith.constant 0 : index
    %c0_84 = arith.constant 0 : index
    %108 = vector.load %arg5[%c2_82, %c0_83, %c0_84] : memref<4x48x48xf32, #tpu.memory_space<vmem>>, vector<1x48x48xf32>
    %109 = vector.shape_cast %108 : vector<1x48x48xf32> to vector<48x48xf32>
    %cst_85 = arith.constant dense<0.000000e+00> : vector<4x48xf32>
    %110 = tpu.matmul %71, %109, %cst_85 {dimension_numbers = #tpu.dot_dimension_numbers<[1], [0], [0], [1], [0, 0, 1, 1], [], []>} : vector<4x48xf32>, vector<48x48xf32>, vector<4x48xf32> -> vector<4x48xf32>
    %c2_86 = arith.constant 2 : index
    %c0_87 = arith.constant 0 : index
    %c0_88 = arith.constant 0 : index
    %111 = vector.load %arg6[%c2_86, %c0_87, %c0_88] : memref<4x48x48xf32, #tpu.memory_space<vmem>>, vector<1x48x48xf32>
    %112 = vector.shape_cast %111 : vector<1x48x48xf32> to vector<48x48xf32>
    %cst_89 = arith.constant dense<0.000000e+00> : vector<4x48xf32>
    %113 = tpu.matmul %74, %112, %cst_89 {dimension_numbers = #tpu.dot_dimension_numbers<[1], [0], [0], [1], [0, 0, 1, 1], [], []>} : vector<4x48xf32>, vector<48x48xf32>, vector<4x48xf32> -> vector<4x48xf32>
    %114 = arith.addf %110, %113 : vector<4x48xf32>
    %c2_90 = arith.constant 2 : index
    %c0_91 = arith.constant 0 : index
    %c0_92 = arith.constant 0 : index
    %115 = vector.load %arg7[%c2_90, %c0_91, %c0_92] : memref<4x1x48xf32, #tpu.memory_space<vmem>>, vector<1x1x48xf32>
    %116 = vector.shape_cast %115 : vector<1x1x48xf32> to vector<1x48xf32>
    %117 = vector.broadcast %116 : vector<1x48xf32> to vector<4x48xf32>
    %118 = arith.addf %114, %117 : vector<4x48xf32>
    %119 = math.tanh %118 : vector<4x48xf32>
    %c3_93 = arith.constant 3 : index
    %c0_94 = arith.constant 0 : index
    %c0_95 = arith.constant 0 : index
    %120 = vector.load %arg5[%c3_93, %c0_94, %c0_95] : memref<4x48x48xf32, #tpu.memory_space<vmem>>, vector<1x48x48xf32>
    %121 = vector.shape_cast %120 : vector<1x48x48xf32> to vector<48x48xf32>
    %cst_96 = arith.constant dense<0.000000e+00> : vector<4x48xf32>
    %122 = tpu.matmul %71, %121, %cst_96 {dimension_numbers = #tpu.dot_dimension_numbers<[1], [0], [0], [1], [0, 0, 1, 1], [], []>} : vector<4x48xf32>, vector<48x48xf32>, vector<4x48xf32> -> vector<4x48xf32>
    %c3_97 = arith.constant 3 : index
    %c0_98 = arith.constant 0 : index
    %c0_99 = arith.constant 0 : index
    %123 = vector.load %arg6[%c3_97, %c0_98, %c0_99] : memref<4x48x48xf32, #tpu.memory_space<vmem>>, vector<1x48x48xf32>
    %124 = vector.shape_cast %123 : vector<1x48x48xf32> to vector<48x48xf32>
    %cst_100 = arith.constant dense<0.000000e+00> : vector<4x48xf32>
    %125 = tpu.matmul %74, %124, %cst_100 {dimension_numbers = #tpu.dot_dimension_numbers<[1], [0], [0], [1], [0, 0, 1, 1], [], []>} : vector<4x48xf32>, vector<48x48xf32>, vector<4x48xf32> -> vector<4x48xf32>
    %126 = arith.addf %122, %125 : vector<4x48xf32>
    %c3_101 = arith.constant 3 : index
    %c0_102 = arith.constant 0 : index
    %c0_103 = arith.constant 0 : index
    %127 = vector.load %arg7[%c3_101, %c0_102, %c0_103] : memref<4x1x48xf32, #tpu.memory_space<vmem>>, vector<1x1x48xf32>
    %128 = vector.shape_cast %127 : vector<1x1x48xf32> to vector<1x48xf32>
    %129 = vector.broadcast %128 : vector<1x48xf32> to vector<4x48xf32>
    %130 = arith.addf %126, %129 : vector<4x48xf32>
    %131 = arith.negf %130 : vector<4x48xf32>
    %132 = math.exp %131 : vector<4x48xf32>
    %cst_104 = arith.constant 1.000000e+00 : f32
    %133 = vector.broadcast %cst_104 : f32 to vector<4x48xf32>
    %134 = arith.addf %133, %132 : vector<4x48xf32>
    %135 = arith.divf %133, %134 : vector<4x48xf32>
    %136 = arith.mulf %107, %75 : vector<4x48xf32>
    %137 = arith.mulf %91, %119 : vector<4x48xf32>
    %138 = arith.addf %136, %137 : vector<4x48xf32>
    %139 = math.tanh %138 : vector<4x48xf32>
    %140 = arith.mulf %135, %139 : vector<4x48xf32>
    %c0_105 = arith.constant 0 : index
    %c0_106 = arith.constant 0 : index
    %141 = vector.load %arg13[%c0_105, %c0_106] : memref<4x48xf32, #tpu.memory_space<vmem>>, vector<4x48xf32>
    tpu.vector_store %arg13[%c0_105, %c0_106], %140 {strides = array<i32>} : memref<4x48xf32, #tpu.memory_space<vmem>>, vector<4x48xf32>,
    %c0_107 = arith.constant 0 : index
    %c0_108 = arith.constant 0 : index
    %142 = vector.load %arg14[%c0_107, %c0_108] : memref<4x48xf32, #tpu.memory_space<vmem>>, vector<4x48xf32>
    tpu.vector_store %arg14[%c0_107, %c0_108], %138 {strides = array<i32>} : memref<4x48xf32, #tpu.memory_space<vmem>>, vector<4x48xf32>,
    %143 = vector.extract_strided_slice %140 {offsets = [3, 0], sizes = [1, 48], strides = [1, 1]} : vector<4x48xf32> to vector<1x48xf32>
    %144 = arith.index_cast %arg0 : i32 to index
    %c0_109 = arith.constant 0 : index
    %145 = vector.load %arg15[%144, %c0_109] : memref<8x48xf32, #tpu.memory_space<vmem>>, vector<1x48xf32>
    tpu.vector_store %arg15[%144, %c0_109], %143 {strides = array<i32>} : memref<8x48xf32, #tpu.memory_space<vmem>>, vector<1x48xf32>,
    %c7_i32 = arith.constant 7 : i32
    %146 = arith.cmpi eq, %arg0, %c7_i32 : i32
    %147 = arith.extui %146 : i1 to i32
    %c0_i32_110 = arith.constant 0 : i32
    %148 = arith.cmpi ne, %147, %c0_i32_110 : i32
    scf.if %148 {
      %c0_111 = arith.constant 0 : index
      %c0_112 = arith.constant 0 : index
      %149 = vector.load %arg15[%c0_111, %c0_112] : memref<8x48xf32, #tpu.memory_space<vmem>>, vector<8x48xf32>
      %c0_113 = arith.constant 0 : index
      %c0_114 = arith.constant 0 : index
      %150 = vector.load %arg8[%c0_113, %c0_114] : memref<48x16xf32, #tpu.memory_space<vmem>>, vector<48x16xf32>
      %cst_115 = arith.constant dense<0.000000e+00> : vector<8x16xf32>
      %151 = tpu.matmul %149, %150, %cst_115 {dimension_numbers = #tpu.dot_dimension_numbers<[1], [0], [0], [1], [0, 0, 1, 1], [], []>} : vector<8x48xf32>, vector<48x16xf32>, vector<8x16xf32> -> vector<8x16xf32>
      %c0_116 = arith.constant 0 : index
      %c0_117 = arith.constant 0 : index
      %152 = vector.load %arg9[%c0_116, %c0_117] : memref<1x16xf32, #tpu.memory_space<vmem>>, vector<1x16xf32>
      %153 = vector.broadcast %152 : vector<1x16xf32> to vector<8x16xf32>
      %154 = arith.addf %151, %153 : vector<8x16xf32>
      %c0_118 = arith.constant 0 : index
      %c0_119 = arith.constant 0 : index
      %155 = vector.load %arg10[%c0_118, %c0_119] : memref<8x16xf32, #tpu.memory_space<vmem>>, vector<8x16xf32>
      tpu.vector_store %arg10[%c0_118, %c0_119], %154 {strides = array<i32>} : memref<8x16xf32, #tpu.memory_space<vmem>>, vector<8x16xf32>,
    } else {
    }
    return
  }
  func.func @transform_0(%arg0: i32) -> (i32, i32, i32) {
    %c0_i32 = arith.constant 0 : i32
    %c0_i32_0 = arith.constant 0 : i32
    %c0_i32_1 = arith.constant 0 : i32
    return %arg0, %c0_i32, %c0_i32_0 : i32, i32, i32
  }
  func.func @transform_1(%arg0: i32) -> (i32, i32, i32) {
    %c0_i32 = arith.constant 0 : i32
    %c0_i32_0 = arith.constant 0 : i32
    %c0_i32_1 = arith.constant 0 : i32
    %c0_i32_2 = arith.constant 0 : i32
    return %c0_i32, %c0_i32_0, %c0_i32_1 : i32, i32, i32
  }
  func.func @transform_2(%arg0: i32) -> (i32, i32, i32) {
    %c0_i32 = arith.constant 0 : i32
    %c0_i32_0 = arith.constant 0 : i32
    %c0_i32_1 = arith.constant 0 : i32
    %c0_i32_2 = arith.constant 0 : i32
    return %c0_i32, %c0_i32_0, %c0_i32_1 : i32, i32, i32
  }
  func.func @transform_3(%arg0: i32) -> (i32, i32, i32) {
    %c0_i32 = arith.constant 0 : i32
    %c0_i32_0 = arith.constant 0 : i32
    %c0_i32_1 = arith.constant 0 : i32
    %c0_i32_2 = arith.constant 0 : i32
    return %c0_i32, %c0_i32_0, %c0_i32_1 : i32, i32, i32
  }
  func.func @transform_4(%arg0: i32) -> (i32, i32, i32) {
    %c0_i32 = arith.constant 0 : i32
    %c0_i32_0 = arith.constant 0 : i32
    %c0_i32_1 = arith.constant 0 : i32
    %c0_i32_2 = arith.constant 0 : i32
    return %c0_i32, %c0_i32_0, %c0_i32_1 : i32, i32, i32
  }
  func.func @transform_5(%arg0: i32) -> (i32, i32, i32) {
    %c0_i32 = arith.constant 0 : i32
    %c0_i32_0 = arith.constant 0 : i32
    %c0_i32_1 = arith.constant 0 : i32
    %c0_i32_2 = arith.constant 0 : i32
    return %c0_i32, %c0_i32_0, %c0_i32_1 : i32, i32, i32
  }
  func.func @transform_6(%arg0: i32) -> (i32, i32, i32) {
    %c0_i32 = arith.constant 0 : i32
    %c0_i32_0 = arith.constant 0 : i32
    %c0_i32_1 = arith.constant 0 : i32
    %c0_i32_2 = arith.constant 0 : i32
    return %c0_i32, %c0_i32_0, %c0_i32_1 : i32, i32, i32
  }
  func.func @transform_7(%arg0: i32) -> (i32, i32) {
    %c0_i32 = arith.constant 0 : i32
    %c0_i32_0 = arith.constant 0 : i32
    %c0_i32_1 = arith.constant 0 : i32
    return %c0_i32, %c0_i32_0 : i32, i32
  }
  func.func @transform_8(%arg0: i32) -> (i32, i32) {
    %c0_i32 = arith.constant 0 : i32
    %c0_i32_0 = arith.constant 0 : i32
    %c0_i32_1 = arith.constant 0 : i32
    return %c0_i32, %c0_i32_0 : i32, i32
  }
  func.func @transform_9(%arg0: i32) -> (i32, i32) {
    %c0_i32 = arith.constant 0 : i32
    %c0_i32_0 = arith.constant 0 : i32
    %c0_i32_1 = arith.constant 0 : i32
    return %c0_i32, %c0_i32_0 : i32, i32
  }
}

</mosaic_0001>

<bundles_post_ra>
// kernel: tpu_custom_call.1
= control target key start
LH: loop header
LB: loop body
LE: loop exit
PB: predicated region body
PF: predicated region fallthrough
CT: control target
= control target key end

     0   :  { %s3047_s0 = inlined_call_operand.hbm [shape: f32[8,4,16], index: 0, kind: input, shape index: {}]   ;;  %s3048_s1 = inlined_call_operand.vmem [shape: f32[4,16,48], index: 1, kind: input, shape index: {}]   ;;  %s3049_s2 = inlined_call_operand.hbm [shape: f32[4,48,48], index: 2, kind: input, shape index: {}]   ;;  %s3050_s3 = inlined_call_operand.vmem [shape: f32[4,1,48], index: 3, kind: input, shape index: {}]   ;;  %s3051_s4 = inlined_call_operand.hbm [shape: f32[4,48,48], index: 4, kind: input, shape index: {}]   ;;  %s3052_s5 = inlined_call_operand.hbm [shape: f32[4,48,48], index: 5, kind: input, shape index: {}]   ;;  %s3053_s6 = inlined_call_operand.vmem [shape: f32[4,1,48], index: 6, kind: input, shape index: {}]   ;;  %s3054_s7 = inlined_call_operand.vmem [shape: f32[48,16], index: 7, kind: input, shape index: {}]   ;;  %s3055_s8 = inlined_call_operand.vmem [shape: f32[1,16], index: 8, kind: input, shape index: {}]   ;;  %s3056_s9 = inlined_call_operand.hbm [shape: f32[8,16], index: 9, kind: output, shape index: {}]  }
   0x1   :  { %3060 = sst [smem:[#allocation20_spill]] %s3049_s2 }
   0x2   :  { %14 = vsyncpa [#allocation8], 0 }
   0x3   :  { %16 = vsyncpa [#allocation8 + $0x1], 0 }
   0x4   :  { %17 = vsyncpa [#allocation11], 0 }
   0x5   :  { %18 = vsyncpa [#allocation14], 0 }
   0x6   :  { %19 = vsyncpa [#allocation9], 0  ;;  %s2674_s30 = smov 0   ;;  %s2676_s10 = smov 0  }
   0x7   :  { %s2678_s11 = smov 0   ;;  %s2680_s12 = smov 0  }
   0x8 LB: > { %s2693_s13 = sadd.s32 4294967295, %s2610_s12   ;;  %p45_p0 = scmp.ne.s32.totalorder %s2602_s10, %s2598_s30  ;;  %s2610_s12 = sphi %s2680_s12, %s3076_s12   ;;  %s2606_s11 = sphi %s2678_s11, %s3075_s11   ;;  %s2602_s10 = sphi %s2676_s10, %s3074_s10   ;;  %s2598_s30 = sphi %s2674_s30, %s3073_s30  }
   0x9   : > { %p3057_p1 = scmp.eq.s32.totalorder %s2693_s13, 0  ;;  %p1926_p2 = scmp.ge.s32.totalorder %s2610_s12, 1 }
   0xa   : > { %p245_p3 = scmp.lt.s32.totalorder %s2610_s12, 9  ;;  %s2612_s16 = smov [#allocation10]  }
   0xb   : > { %p2702_p5 = por %p3057_p1, %p45_p0  ;;  %s260_s17 = sshll.u32 %s2612_s16, 4  ;;  %s261_s17 = int_to_ptr.vmem [resolvable:$true] %s260_s17 }
   0xc   : > { %p2706_p6 = pnand %p1926_p2, %p245_p3  ;;  %s2613_s19 = smov [#allocation12]  }
   0xd   : > { %s3061_s14 = scalar_select %p2702_p5, 1, 0 }
   0xe   : > { %s3062_s15 = scalar_select %p2706_p6, 1, 0 }
   0xf   : > { %p2336_p7 = pneg %p2706_p6  ;;  %s276_s20 = sshll.u32 %s2613_s19, 4  ;;  %s277_s20 = int_to_ptr.vmem [resolvable:$true] %s276_s20 }
  0x10   : > { %s2614_s21 = smov [#allocation13]   ;;  %s2445_s23 = scalar_lea.vmem %s261_s17, 3072 }
  0x11   : > { %p2714_p8 = pnand %p2336_p7, %p3057_p1  ;;  %s289_s22 = sshll.u32 %s2614_s21, 4  ;;  %s290_s22 = int_to_ptr.vmem [resolvable:$true] %s289_s22 }
  0x12   : > { %p2446_p10 = scmp.ne.s32.totalorder %s261_s17, %s2445_s23  ;;  %p2453_p13 = scmp.lt.s32.totalorder %s261_s17, %s261_s17 }
  0x13   : > { %p2436_p9 = pneg %p2714_p8  ;;  %p2454_p0 = scmp.lt.s32.totalorder %s2445_s23, %s2445_s23 }
  0x15   : > { %p2448_p11 = pnand %p2446_p10, %p2436_p9  ;;  %p2455_p2 = por %p2454_p0, %p2453_p13 }
  0x17   : > { %p2449_p12 = pneg %p2448_p11 }
  0x19   : > { %p2456_p3 = pnand %p2455_p2, %p2449_p12 }
  0x1b   : > { %2459 = shalt.err (!%p2456_p3)
}
  0x1c   : > { %s2615_s24 = smov 128   ;;  %s2616_s25 = smov 8  }
  0x1d   : > { %s3064_s2 = sld [smem:[#allocation20_spill]]  ;;  %s2471_s28 = scalar_lea.vmem %s277_s20, 3072 }
  0x1e   : > { %p2472_p7 = scmp.ne.s32.totalorder %s277_s20, %s2471_s28  ;;  %p2479_p4 = scmp.lt.s32.totalorder %s277_s20, %s277_s20 }
  0x1f   : > { %p2480_p1 = scmp.lt.s32.totalorder %s2471_s28, %s2471_s28 }
  0x20   : > { %p2474_p10 = pnand %p2472_p7, %p2436_p9 }
  0x21   : > { %p2481_p13 = por %p2480_p1, %p2479_p4 }
  0x22   : > { %p2475_p11 = pneg %p2474_p10 }
  0x23   : > { %2339 = dma.hbm_to_vmem [thread:$0]  (!%p2714_p8), %s3064_s2, 3072, %s261_s17, [#allocation11], %s2615_s24, %s2615_s24, %s2616_s25  }
  0x24   : > { %p2482_p12 = pnand %p2481_p13, %p2475_p11 }
  0x26   : > { %2485 = shalt.err (!%p2482_p12)
}
  0x27   : > { %2342 = dma.hbm_to_vmem [thread:$0]  (!%p2714_p8), %s3051_s4, 3072, %s277_s20, [#allocation11], %s2615_s24, %s2615_s24, %s2616_s25  }
  0x28   : > { %s2497_s16 = scalar_lea.vmem %s290_s22, 3072  ;;  %p2505_p7 = scmp.lt.s32.totalorder %s290_s22, %s290_s22 }
  0x29   : > { %p2498_p0 = scmp.ne.s32.totalorder %s290_s22, %s2497_s16  ;;  %p2506_p10 = scmp.lt.s32.totalorder %s2497_s16, %s2497_s16 }
  0x2b   : > { %p2500_p2 = pnand %p2498_p0, %p2436_p9  ;;  %p2507_p5 = por %p2506_p10, %p2505_p7 }
  0x2d   : > { %p2501_p3 = pneg %p2500_p2 }
  0x2f   : > { %p2508_p1 = pnand %p2507_p5, %p2501_p3 }
  0x31   : > { %2511 = shalt.err (!%p2508_p1)
}
  0x32   : > { %2345 = dma.hbm_to_vmem [thread:$0]  (!%p2714_p8), %s3052_s5, 3072, %s290_s22, [#allocation14], %s2615_s24, %s2615_s24, %s2616_s25  }
  0x33   : > { %s2745_s20 = sadd.s32 1, %s2610_s12   ;;  %s32_s23 = sadd.s32 1, %s2606_s11 }
  0x34   : > { %s29_s21 = ssub.s32 %s2610_s12, %s2745_s20  ;;  %p39_p5 = scmp.ne.s32.totalorder %s2606_s11, %s2602_s10 }
  0x35   : > { %p30_p4 = scmp.eq.s32.totalorder %s29_s21, 0  ;;  %p40_p9 = scmp.eq.s32.totalorder %s2610_s12, 0 }
  0x36   : > { %p2353_p11 = scmp.lt.s32.totalorder %s2610_s12, 8  ;;  %s312_s26 = sand.u32 1, %s2606_s11  }
  0x37   : > { %s2755_s18 = scalar_select %p30_p4, %s2606_s11, %s32_s23  }
  0x38   : > { %p41_p13 = por %p40_p9, %p39_p5  ;;  %s1931_s27 = sshll.u32 %s312_s26, 2 }
  0x39   : > { %s1932_s28 = sshll.u32 %s2610_s12, 6  ;;  %s316_s22 = scalar_lea.vmem [#allocation7], %s1931_s27 }
  0x3a   : > { %s2762_s16 = scalar_lea.hbm %s3047_s0, %s1932_s28  ;;  %s323_s24 = sshll.u32 %s316_s22, 4  ;;  %s324_s24 = int_to_ptr.vmem [resolvable:$true] %s323_s24 }
  0x3b   : > { %p2764_p8 = pnand %p2353_p11, %p41_p13  ;;  %s313_s17 = scalar_lea.sflag [#allocation8], %s312_s26 }
  0x3c   : > { %s2512_s19 = scalar_lea.hbm %s2762_s16, 64  ;;  %s2517_s28 = scalar_lea.hbm %s3047_s0, 512 }
  0x3d   : > { %p2513_p12 = scmp.ne.s32.totalorder %s2762_s16, %s2512_s19  ;;  %p2514_p0 = pneg %p2764_p8 }
  0x3e   : > { %p2518_p7 = scmp.lt.s32.totalorder %s2762_s16, %s3047_s0  ;;  %p2519_p10 = scmp.lt.s32.totalorder %s2517_s28, %s2512_s19 }
  0x3f   : > { %p2515_p2 = pnand %p2514_p0, %p2513_p12 }
  0x40   : > { %p2520_p1 = por %p2519_p10, %p2518_p7 }
  0x41   : > { %p2516_p3 = pneg %p2515_p2 }
  0x43   : > { %p2521_p4 = pnand %p2520_p1, %p2516_p3 }
  0x45   : > { %2524 = shalt.err (!%p2521_p4)
}
  0x46   : > { %s2525_s30 = scalar_lea.vmem %s324_s24, 64  ;;  %s2617_s26 = smov [#allocation7]  }
  0x47   : > { %p2526_p5 = scmp.ne.s32.totalorder %s324_s24, %s2525_s30  ;;  %s2530_s22 = sshll.u32 %s2617_s26, 4  ;;  %s2531_s22 = int_to_ptr.vmem [resolvable:$false] %s2530_s22 }
  0x48   : > { %s2532_s2 = scalar_lea.vmem %s2531_s22, 128  ;;  %p2533_p13 = scmp.lt.s32.totalorder %s324_s24, %s2531_s22 }
  0x49   : > { %p2528_p9 = pnand %p2526_p5, %p2514_p0  ;;  %p2534_p12 = scmp.lt.s32.totalorder %s2532_s2, %s2525_s30 }
  0x4b   : > { %p2529_p11 = pneg %p2528_p9  ;;  %p2535_p2 = por %p2534_p12, %p2533_p13 }
  0x4d   : > { %p2536_p6 = pnand %p2535_p2, %p2529_p11 }
  0x4f   : > { %2539 = shalt.err (!%p2536_p6)
}
  0x50   : > { %2349 = dma.hbm_to_vmem [thread:$0]  (!%p2764_p8), %s2762_s16, 64, %s324_s24, %s313_s17  }
  0x51   : > { %p3066_p3 = scmp.ne.s32.totalorder %s3062_s15, 0 }
  0x52   : > { %s334_s19 = sand.u32 (!%p3066_p3), 1, %s2602_s10   ;;  %p3067_p0 = scmp.ne.s32.totalorder (!%p3066_p3), %s3061_s14, 0 }
  0x53   : > { %332 = sbr.rel (%p3066_p3) target bundleno = 870 (0x366), region = 56  ;;  %s1934_s21 = sshll.u32 (!%p3066_p3), %s334_s19, 2 }
  0x54   : > { %s335_s23 = scalar_lea.sflag (!%p3066_p3), [#allocation8], %s334_s19  ;;  %s338_s28 = scalar_lea.vmem (!%p3066_p3), [#allocation7], %s1934_s21 }
  0x58   : > { %2581 = dma.done.wait (%p3067_p0), %s335_s23, 64  }
  0x59   : > { %2583 = vsyncadd (%p3067_p0), %s335_s23, 4294967232  ;;  %p3068_p6 = scmp.eq.s32.totalorder %s2693_s13, 0 }
  0x5b   : > { %2585 = dma.done.wait (%p3068_p6), [#allocation11], 6144   ;;  %p3069_p7 = pmov %p3068_p6 }
  0x5c   : > { %p3070_p8 = pmov %p3068_p6 }
  0x5d   : > { %2587 = vsyncadd (%p3069_p7), [#allocation11], 4294961152 }
  0x5e   : > { %2589 = dma.done.wait (%p3070_p8), [#allocation14], 3072   ;;  %p3071_p10 = pmov %p3068_p6 }
  0x5f   : > { %p3072_p1 = scmp.ne.s32.totalorder %s2693_s13, 0 }
  0x60   : > { %2591 = vsyncadd (%p3071_p10), [#allocation14], 4294964224 }
  0x61   : > { %383 = sbr.rel (%p3072_p1) target bundleno = 105 (0x69), region = 76 }
  0x66   : > { %vm384_vm0 = vcmask 388096   ;;  %v2618_v0 = vmov 0.0  }
  0x67   : > { %385 = vst.msk [vmem:[#allocation2] sm:$0xf] %vm384_vm0, %v2618_v0  ;;  %386 = vst.msk [vmem:[#allocation3] sm:$0xf] %vm384_vm0, %v2618_v0 }
  0x68   : > { %387 = vst.msk [vmem:[#allocation4] sm:$0xf] %vm384_vm0, %v2618_v0  ;;  %388 = vst.msk [vmem:[#allocation5] sm:$0xf] %vm384_vm0, %v2618_v0 }
  0x69 PF: > { %v399_v1 = vld [vmem:[#allocation10 + $0x28] sm:$0xff]  ;;  %v2619_v3 = vmov 0.0   ;;  %v398_v4 = vld [vmem:[#allocation10 + $0x20] sm:$0xff]  ;;  %v2809_v6 = vld [vmem:[%s338_s28] sm:$0xf]  ;;  %vm474_vm1 = vcmask 130048  }
  0x6a   : > { %v393_v2 = vld [vmem:[%s3048_s1 + $0x8] sm:$0xff]  ;;  %2095 = vmatprep.subr.mxu0 %v2619_v3  ;;  %2110 = vmatprep.subr.mxu1 %v2619_v3  ;;  %v392_v5 = vld [vmem:[%s3048_s1] sm:$0xff]  ;;  %v397_v7 = vld [vmem:[#allocation10 + $0x18] sm:$0xff]  ;;  %vm2620_vm2 = vmmov 0   ;;  %vm400_vm3 = vcmask 392192   ;;  %vm1057_vm4 = vcmask 388096  }
  0x6b   : > { %2096 = vmatpush3.msra.mxu0 %v399_v1  ;;  %2111 = vmatpush3.msra.mxu1 %v393_v2  ;;  %v571_v8 = vld [vmem:[#allocation10 + $0x58] sm:$0xff]  ;;  %v396_v9 = vld [vmem:[#allocation10 + $0x10] sm:$0xff]  ;;  %v395_v11 = vld [vmem:[#allocation10 + $0x8] sm:$0xff]  ;;  %vm1744_vm5 = vcmask 388099   ;;  %s1989_s2 = scalar_lea.vmem [#allocation6], %s2610_s12  ;;  %p1982_p4 = scmp.ne.s32.totalorder %s2693_s13, 7 }
  0x6c   : > { %2097 = vmatprep.subr.mxu0 %v2619_v3  ;;  %2112 = vmatprep.subr.mxu1 %v2619_v3  ;;  %v570_v10 = vld [vmem:[#allocation10 + $0x50] sm:$0xff]  ;;  %v569_v12 = vld [vmem:[#allocation10 + $0x48] sm:$0xff]  ;;  %v394_v13 = vld [vmem:[#allocation10] sm:$0xff] }
  0x6d   : > { %2098 = vmatpush3.msra.mxu0 %v398_v4  ;;  %2113 = vmatpush3.msra.mxu1 %v392_v5  ;;  %v568_v14 = vld [vmem:[#allocation10 + $0x40] sm:$0xff]  ;;  %v567_v16 = vld [vmem:[#allocation10 + $0x38] sm:$0xff]  ;;  %v566_v18 = vld [vmem:[#allocation10 + $0x30] sm:$0xff] }
  0x6e   : > { %2114 = vmatprep.mubr.msk.f32.mxu1 %vm2620_vm2, %v2619_v3  ;;  %2099 = vmatprep.subr.mxu0 %v2619_v3  ;;  %v2821_v15 = vld [vmem:[#allocation2] sm:$0xf]  ;;  %v1944_v17 = vld [vmem:[%s3048_s1 + $0x18] sm:$0xff]  ;;  %v1943_v19 = vld [vmem:[%s3048_s1 + $0x10] sm:$0xff] }
  0x6f   : > { %2115 = vmatmul.mubr.msk.f32.vlgmr.msra.gmra.mxu1 %vm474_vm1, %v2809_v6  ;;  %2117 = vmatprep.subr.mxu1 %v2619_v3  ;;  %v736_v20 = vld [vmem:[#allocation10 + $0x88] sm:$0xff]  ;;  %v735_v22 = vld [vmem:[#allocation10 + $0x80] sm:$0xff]  ;;  %v734_v24 = vld [vmem:[#allocation10 + $0x78] sm:$0xff] }
  0x70   : > { %2100 = vmatpush3.msra.mxu0 %v397_v7  ;;  %2118 = vmatpush3.msra.mxu1 %v571_v8  ;;  %v1951_v21 = vld [vmem:[%s3048_s1 + $0x28] sm:$0xff]  ;;  %v1950_v23 = vld [vmem:[%s3048_s1 + $0x20] sm:$0xff]  ;;  %v896_v25 = vld [vmem:[#allocation10 + $0xb8] sm:$0xff] }
  0x71   : > { %2101 = vmatprep.subr.mxu0 %v2619_v3  ;;  %2119 = vmatprep.subr.mxu1 %v2619_v3  ;;  %v733_v26 = vld [vmem:[#allocation10 + $0x70] sm:$0xff]  ;;  %v732_v28 = vld [vmem:[#allocation10 + $0x68] sm:$0xff]  ;;  %v731_v30 = vld [vmem:[#allocation10 + $0x60] sm:$0xff] }
  0x72   : > { %2102 = vmatpush3.msra.mxu0 %v396_v9  ;;  %2120 = vmatpush3.msra.mxu1 %v570_v10  ;;  %v895_v27 = vld [vmem:[#allocation10 + $0xb0] sm:$0xff]  ;;  %v894_v29 = vld [vmem:[#allocation10 + $0xa8] sm:$0xff]  ;;  %v893_v31 = vld [vmem:[#allocation10 + $0xa0] sm:$0xff] }
  0x73   : > { %2103 = vmatprep.subr.mxu0 %v2619_v3  ;;  %2121 = vmatprep.subr.mxu1 %v2619_v3  ;;  %v892_v32 = vld [vmem:[#allocation10 + $0x98] sm:$0xff]  ;;  %v891_v34 = vld [vmem:[#allocation10 + $0x90] sm:$0xff]  ;;  %v1073_v36 = vld [vmem:[#allocation13 + $0x28] sm:$0xff] }
  0x74   : > { %2104 = vmatpush3.msra.mxu0 %v395_v11  ;;  %2122 = vmatpush3.msra.mxu1 %v569_v12  ;;  %v1957_v33 = vld [vmem:[%s3048_s1 + $0x38] sm:$0xff]  ;;  %v1956_v35 = vld [vmem:[%s3048_s1 + $0x30] sm:$0xff]  ;;  %v1067_v37 = vld [vmem:[#allocation12 + $0x28] sm:$0xff] }
  0x75   : > { %2105 = vmatprep.subr.mxu0 %v2619_v3  ;;  %2123 = vmatprep.subr.mxu1 %v2619_v3  ;;  %v1072_v38 = vld [vmem:[#allocation13 + $0x20] sm:$0xff]  ;;  %v1071_v40 = vld [vmem:[#allocation13 + $0x18] sm:$0xff]  ;;  %v1070_v42 = vld [vmem:[#allocation13 + $0x10] sm:$0xff] }
  0x76   : > { %2106 = vmatpush3.msra.mxu0 %v394_v13  ;;  %2107 = vmatprep.mubr.msk.f32.mxu0 %vm2620_vm2, %v2619_v3  ;;  %v1066_v39 = vld [vmem:[#allocation12 + $0x20] sm:$0xff]  ;;  %v1065_v41 = vld [vmem:[#allocation12 + $0x18] sm:$0xff]  ;;  %v1064_v43 = vld [vmem:[#allocation12 + $0x10] sm:$0xff] }
  0x77   : > { %2124 = vmatpush3.msra.mxu1 %v568_v14  ;;  %2108 = vmatmul.mubr.msk.f32.vlgmr.msra.gmra.mxu0 %vm400_vm3, %v2821_v15  ;;  %v1069_v44 = vld [vmem:[#allocation13 + $0x8] sm:$0xff]  ;;  %v1068_v46 = vld [vmem:[#allocation13] sm:$0xff]  ;;  %v1247_v49 = vld [vmem:[#allocation13 + $0x58] sm:$0xff] }
  0x78   : > { %2125 = vmatprep.subr.mxu1 %v2619_v3  ;;  %2132 = vmatprep.subr.mxu0 %v2619_v3  ;;  %v1063_v45 = vld [vmem:[#allocation12 + $0x8] sm:$0xff]  ;;  %v1062_v47 = vld [vmem:[#allocation12] sm:$0xff]  ;;  %v1246_v50 = vld [vmem:[#allocation13 + $0x50] sm:$0xff] }
  0x79   : > { %2126 = vmatpush3.msra.mxu1 %v567_v16  ;;  %2133 = vmatpush3.msra.mxu0 %v1944_v17  ;;  %v2905_v48 = vld [vmem:[#allocation4] sm:$0xf]  ;;  %v1244_v52 = vld [vmem:[#allocation13 + $0x40] sm:$0xff]  ;;  %v1243_v53 = vld [vmem:[#allocation13 + $0x38] sm:$0xff] }
  0x7a   : > { %2127 = vmatprep.subr.mxu1 %v2619_v3  ;;  %2134 = vmatprep.subr.mxu0 %v2619_v3  ;;  %v1245_v51 = vld [vmem:[#allocation13 + $0x48] sm:$0xff]  ;;  %v1242_v54 = vld [vmem:[#allocation13 + $0x30] sm:$0xff]  ;;  %v1415_v56 = vld [vmem:[#allocation13 + $0x80] sm:$0xff] }
  0x7b   : > { %2128 = vmatpush3.msra.mxu1 %v566_v18  ;;  %2129 = vmatprep.mubr.msk.f32.mxu1 %vm2620_vm2, %v2619_v3  ;;  %v1416_v55 = vld [vmem:[#allocation13 + $0x88] sm:$0xff]  ;;  %v1414_v57 = vld [vmem:[#allocation13 + $0x78] sm:$0xff]  ;;  %v1413_v58 = vld [vmem:[#allocation13 + $0x70] sm:$0xff] }
  0x7c   : > { %2135 = vmatpush3.msra.mxu0 %v1943_v19  ;;  %2136 = vmatprep.mubr.msk.f32.mxu0 %vm2620_vm2, %v2619_v3  ;;  %v1412_v59 = vld [vmem:[#allocation13 + $0x68] sm:$0xff]  ;;  %v1411_v60 = vld [vmem:[#allocation13 + $0x60] sm:$0xff]  ;;  %v1580_v61 = vld [vmem:[#allocation13 + $0xb8] sm:$0xff] }
  0x7d   : > { %2130 = vmatmul.mubr.msk.f32.vlgmr.msra.gmra.mxu1 %vm400_vm3, %v2821_v15  ;;  %2137 = vmatmul.mubr.msk.f32.vlgmr.msra.gmra.mxu0 %vm474_vm1, %v2809_v6  ;;  %v1579_v62 = vld [vmem:[#allocation13 + $0xb0] sm:$0xff]  ;;  %v1578_v63 = vld [vmem:[#allocation13 + $0xa8] sm:$0xff]  ;;  %v1577_v0 = vld [vmem:[#allocation13 + $0xa0] sm:$0xff] }
  0x7e   : > { %2139 = vmatprep.subr.mxu0 %v2619_v3  ;;  %2154 = vmatprep.subr.mxu1 %v2619_v3  ;;  %v1576_v1 = vld [vmem:[#allocation13 + $0x98] sm:$0xff]  ;;  %v1575_v2 = vld [vmem:[#allocation13 + $0x90] sm:$0xff]  ;;  %v1941_v7 = vld [vmem:[%s3050_s3] ss:$0 sm:$0xff] }
  0x7f   : > { %2140 = vmatpush3.msra.mxu0 %v736_v20  ;;  %2155 = vmatpush3.msra.mxu1 %v1951_v21  ;;  %v1948_v14 = vld [vmem:[%s3050_s3 + $0x1] ss:$0 sm:$0xff] }
  0x80   : > { %2141 = vmatprep.subr.mxu0 %v2619_v3  ;;  %2156 = vmatprep.subr.mxu1 %v2619_v3 }
  0x81   : > { %2142 = vmatpush3.msra.mxu0 %v735_v22  ;;  %2157 = vmatpush3.msra.mxu1 %v1950_v23 }
  0x82   : > { %2143 = vmatprep.subr.mxu0 %v2619_v3  ;;  %2158 = vmatprep.mubr.msk.f32.mxu1 %vm2620_vm2, %v2619_v3 }
  0x83   : > { %2144 = vmatpush3.msra.mxu0 %v734_v24  ;;  %2161 = vmatprep.subr.mxu1 %v2619_v3 }
  0x84   : > { %2145 = vmatprep.subr.mxu0 %v2619_v3  ;;  %2159 = vmatmul.mubr.msk.f32.vlgmr.msra.gmra.mxu1 %vm474_vm1, %v2809_v6 }
  0x85   : > { %2162 = vmatpush3.msra.mxu1 %v896_v25  ;;  %2146 = vmatpush3.msra.mxu0 %v733_v26  ;;  %v1955_v25 = vld [vmem:[%s3050_s3 + $0x2] ss:$0 sm:$0xff] }
  0x86   : > { %2163 = vmatprep.subr.mxu1 %v2619_v3  ;;  %2147 = vmatprep.subr.mxu0 %v2619_v3 }
  0x87   : > { %2164 = vmatpush3.msra.mxu1 %v895_v27  ;;  %2148 = vmatpush3.msra.mxu0 %v732_v28 }
  0x88   : > { %2165 = vmatprep.subr.mxu1 %v2619_v3  ;;  %2149 = vmatprep.subr.mxu0 %v2619_v3 }
  0x89   : > { %2166 = vmatpush3.msra.mxu1 %v894_v29  ;;  %2150 = vmatpush3.msra.mxu0 %v731_v30 }
  0x8a   : > { %2151 = vmatprep.mubr.msk.f32.mxu0 %vm2620_vm2, %v2619_v3  ;;  %2167 = vmatprep.subr.mxu1 %v2619_v3 }
  0x8b   : > { %2152 = vmatmul.mubr.msk.f32.vlgmr.msra.gmra.mxu0 %vm400_vm3, %v2821_v15  ;;  %2168 = vmatpush3.msra.mxu1 %v893_v31 }
  0x8c   : > { %2169 = vmatprep.subr.mxu1 %v2619_v3  ;;  %2176 = vmatprep.subr.mxu0 %v2619_v3 }
  0x8d   : > { %2170 = vmatpush3.msra.mxu1 %v892_v32  ;;  %2177 = vmatpush3.msra.mxu0 %v1957_v33  ;;  %v1961_v32 = vld [vmem:[%s3050_s3 + $0x3] ss:$0 sm:$0xff] }
  0x8e   : > { %2171 = vmatprep.subr.mxu1 %v2619_v3  ;;  %2178 = vmatprep.subr.mxu0 %v2619_v3 }
  0x8f   : > { %2172 = vmatpush3.msra.mxu1 %v891_v34  ;;  %2173 = vmatprep.mubr.msk.f32.mxu1 %vm2620_vm2, %v2619_v3 }
  0x90   : > { %2179 = vmatpush3.msra.mxu0 %v1956_v35  ;;  %2180 = vmatprep.mubr.msk.f32.mxu0 %vm2620_vm2, %v2619_v3 }
  0x91   : > { %2174 = vmatmul.mubr.msk.f32.vlgmr.msra.gmra.mxu1 %vm400_vm3, %v2821_v15  ;;  %2181 = vmatmul.mubr.msk.f32.vlgmr.msra.gmra.mxu0 %vm474_vm1, %v2809_v6 }
  0x92   : > { %2183 = vmatprep.subr.mxu0 %v2619_v3  ;;  %2198 = vmatprep.subr.mxu1 %v2619_v3 }
  0x93   : > { %2195 = vmatprep.mubr.msk.f32.mxu0 %vm2620_vm2, %v2619_v3  ;;  %2210 = vmatprep.mubr.msk.f32.mxu1 %vm2620_vm2, %v2619_v3 }
  0x94   : > { %2184 = vmatpush3.msra.mxu0 %v1073_v36  ;;  %2199 = vmatpush3.msra.mxu1 %v1067_v37 }
  0x95   : > { %2185 = vmatprep.subr.mxu0 %v2619_v3  ;;  %2200 = vmatprep.subr.mxu1 %v2619_v3 }
  0x96   : > { %2186 = vmatpush3.msra.mxu0 %v1072_v38  ;;  %2201 = vmatpush3.msra.mxu1 %v1066_v39 }
  0x97   : > { %2187 = vmatprep.subr.mxu0 %v2619_v3  ;;  %2202 = vmatprep.subr.mxu1 %v2619_v3 }
  0x98   : > { %2188 = vmatpush3.msra.mxu0 %v1071_v40  ;;  %2203 = vmatpush3.msra.mxu1 %v1065_v41  ;;  %v391_v40 = vld [vmem:[#allocation3] sm:$0xf] }
  0x99   : > { %2189 = vmatprep.subr.mxu0 %v2619_v3  ;;  %2204 = vmatprep.subr.mxu1 %v2619_v3 }
  0x9a   : > { %2190 = vmatpush3.msra.mxu0 %v1070_v42  ;;  %2205 = vmatpush3.msra.mxu1 %v1064_v43 }
  0x9b   : > { %2191 = vmatprep.subr.mxu0 %v2619_v3  ;;  %2206 = vmatprep.subr.mxu1 %v2619_v3 }
  0x9c   : > { %2192 = vmatpush3.msra.mxu0 %v1069_v44  ;;  %2207 = vmatpush3.msra.mxu1 %v1063_v45 }
  0x9d   : > { %2193 = vmatprep.subr.mxu0 %v2619_v3  ;;  %2208 = vmatprep.subr.mxu1 %v2619_v3 }
  0x9e   : > { %2194 = vmatpush3.msra.mxu0 %v1068_v46  ;;  %2209 = vmatpush3.msra.mxu1 %v1062_v47 }
  0x9f   : > { %2213 = vmatprep.subr.mxu0 %v2619_v3  ;;  %2196 = vmatmul.mubr.msk.f32.vlgmr.msra.gmra.mxu0 %vm400_vm3, %v2905_v48 }
  0xa0   : > { %2214 = vmatpush3.msra.mxu0 %v1247_v49  ;;  %2228 = vmatprep.subr.mxu1 %v2619_v3 }
  0xa1   : > { %2215 = vmatprep.subr.mxu0 %v2619_v3  ;;  %2225 = vmatprep.mubr.msk.f32.mxu0 %vm2620_vm2, %v2619_v3 }
  0xa2   : > { %2216 = vmatpush3.msra.mxu0 %v1246_v50 }
  0xa3   : > { %2217 = vmatprep.subr.mxu0 %v2619_v3 }
  0xa4   : > { %2218 = vmatpush3.msra.mxu0 %v1245_v51  ;;  %v1240_v51 = vld [vmem:[#allocation12 + $0x58] sm:$0xff] }
  0xa5   : > { %2219 = vmatprep.subr.mxu0 %v2619_v3 }
  0xa6   : > { %2220 = vmatpush3.msra.mxu0 %v1244_v52  ;;  %v1239_v52 = vld [vmem:[#allocation12 + $0x50] sm:$0xff] }
  0xa7   : > { %2221 = vmatprep.subr.mxu0 %v2619_v3 }
  0xa8   : > { %2222 = vmatpush3.msra.mxu0 %v1243_v53  ;;  %v1238_v53 = vld [vmem:[#allocation12 + $0x48] sm:$0xff] }
  0xa9   : > { %2223 = vmatprep.subr.mxu0 %v2619_v3 }
  0xaa   : > { %2224 = vmatpush3.msra.mxu0 %v1242_v54  ;;  %v1237_v54 = vld [vmem:[#allocation12 + $0x40] sm:$0xff] }
  0xab   : > { %2243 = vmatprep.subr.mxu0 %v2619_v3  ;;  %2226 = vmatmul.mubr.msk.f32.vlgmr.msra.gmra.mxu0 %vm400_vm3, %v2905_v48 }
  0xac   : > { %2244 = vmatpush3.msra.mxu0 %v1416_v55  ;;  %2255 = vmatprep.mubr.msk.f32.mxu0 %vm2620_vm2, %v2619_v3  ;;  %v1236_v55 = vld [vmem:[#allocation12 + $0x38] sm:$0xff] }
  0xad   : > { %2245 = vmatprep.subr.mxu0 %v2619_v3 }
  0xae   : > { %2246 = vmatpush3.msra.mxu0 %v1415_v56  ;;  %v1235_v56 = vld [vmem:[#allocation12 + $0x30] sm:$0xff] }
  0xaf   : > { %2247 = vmatprep.subr.mxu0 %v2619_v3 }
  0xb0   : > { %2248 = vmatpush3.msra.mxu0 %v1414_v57  ;;  %v1409_v57 = vld [vmem:[#allocation12 + $0x88] sm:$0xff] }
  0xb1   : > { %2249 = vmatprep.subr.mxu0 %v2619_v3 }
  0xb2   : > { %2250 = vmatpush3.msra.mxu0 %v1413_v58  ;;  %v1408_v58 = vld [vmem:[#allocation12 + $0x80] sm:$0xff] }
  0xb3   : > { %2251 = vmatprep.subr.mxu0 %v2619_v3 }
  0xb4   : > { %2252 = vmatpush3.msra.mxu0 %v1412_v59  ;;  %v1407_v59 = vld [vmem:[#allocation12 + $0x78] sm:$0xff] }
  0xb5   : > { %2253 = vmatprep.subr.mxu0 %v2619_v3 }
  0xb6   : > { %2254 = vmatpush3.msra.mxu0 %v1411_v60  ;;  %v1406_v60 = vld [vmem:[#allocation12 + $0x70] sm:$0xff] }
  0xb7   : > { %2273 = vmatprep.subr.mxu0 %v2619_v3  ;;  %2256 = vmatmul.mubr.msk.f32.vlgmr.msra.gmra.mxu0 %vm400_vm3, %v2905_v48 }
  0xb8   : > { %2274 = vmatpush3.msra.mxu0 %v1580_v61  ;;  %2285 = vmatprep.mubr.msk.f32.mxu0 %vm2620_vm2, %v2619_v3  ;;  %v1405_v61 = vld [vmem:[#allocation12 + $0x68] sm:$0xff] }
  0xb9   : > { %2275 = vmatprep.subr.mxu0 %v2619_v3 }
  0xba   : > { %2276 = vmatpush3.msra.mxu0 %v1579_v62  ;;  %v1404_v62 = vld [vmem:[#allocation12 + $0x60] sm:$0xff] }
  0xbb   : > { %2277 = vmatprep.subr.mxu0 %v2619_v3 }
  0xbc   : > { %2278 = vmatpush3.msra.mxu0 %v1578_v63  ;;  %v1573_v63 = vld [vmem:[#allocation12 + $0xb8] sm:$0xff] }
  0xbd   : > { %2279 = vmatprep.subr.mxu0 %v2619_v3 }
  0xbe   : > { %2280 = vmatpush3.msra.mxu0 %v1577_v0  ;;  %v1572_v0 = vld [vmem:[#allocation12 + $0xb0] sm:$0xff] }
  0xbf   : > { %2281 = vmatprep.subr.mxu0 %v2619_v3 }
  0xc0   : > { %2282 = vmatpush3.msra.mxu0 %v1576_v1  ;;  %v1571_v1 = vld [vmem:[#allocation12 + $0xa8] sm:$0xff] }
  0xc1   : > { %2283 = vmatprep.subr.mxu0 %v2619_v3 }
  0xc2   : > { %2284 = vmatpush3.msra.mxu0 %v1575_v2  ;;  %v1570_v2 = vld [vmem:[#allocation12 + $0xa0] sm:$0xff] }
  0xc3   : > { %2286 = vmatmul.mubr.msk.f32.vlgmr.msra.gmra.mxu0 %vm400_vm3, %v2905_v48 }
 0x12f   : > { %v544_v4 = vpop.f32.mrf.mxu1 }
 0x131   : > { %v2116_v5 = vpop.f32.mrf.mxu1 }
 0x132   : > { %v1568_v5 = vld [vmem:[#allocation12 + $0x90] sm:$0xff] }
 0x137   : > { %v470_v6 = vpop.f32.mrf.mxu0 }
 0x138   : > { %v545_v8 = vadd.f32 %v544_v4, %v470_v6  ;;  %v1569_v4 = vld [vmem:[#allocation12 + $0x98] sm:$0xff] }
 0x139   : > { %v2109_v9 = vpop.f32.mrf.mxu0 }
 0x13a   : > { %v555_v10 = vadd.f32 %v1941_v7, %v545_v8 }
 0x13c   : > { %v1942_v11 = vmul.f32 -1.442695, %v555_v10 }
 0x13d   : > { %v638_v12 = vpop.f32.mrf.mxu1  ;;  %v708_v13 = vpop.f32.mrf.mxu0 }
 0x13e   : > { %2402 = vpow2.f32 %v1942_v11  ;;  %v709_v15 = vadd.f32 %v708_v13, %v638_v12 }
 0x13f   : > { %v2131_v16 = vpop.f32.mrf.mxu1  ;;  %v2138_v17 = vpop.f32.mrf.mxu0 }
 0x140   : > { %v720_v18 = vadd.f32 %v1948_v14, %v709_v15  ;;  %v1965_v17 = vld [vmem:[%s3053_s6] ss:$0 sm:$0xff] }
 0x142   : > { %v1949_v19 = vmul.f32 -1.442695, %v720_v18 }
 0x144   : > { %2404 = vpow2.f32 %v1949_v19  ;;  %v873_v20 = vpop.f32.mrf.mxu1 }
 0x146   : > { %v2160_v21 = vpop.f32.mrf.mxu1 }
 0x14b   : > { %v2403_v22 = vpop.eup %2402  ;;  %v803_v23 = vpop.f32.mrf.mxu0 }
 0x14c   : > { %v874_v24 = vadd.f32 %v873_v20, %v803_v23  ;;  %v559_v27 = vadd.f32 1.0, %v2403_v22  ;;  %v1970_v20 = vld [vmem:[%s3053_s6 + $0x1] ss:$0 sm:$0xff] }
 0x14d   : > { %v2153_v26 = vpop.f32.mrf.mxu0 }
 0x14e   : > { %v885_v28 = vadd.f32 %v1955_v25, %v874_v24  ;;  %2406 = vrcp.f32 %v559_v27  ;;  %v1975_v27 = vld [vmem:[%s3053_s6 + $0x2] ss:$0 sm:$0xff] }
 0x150   : > { %2408 = vtanh.f32 %v885_v28 }
 0x151   : > { %v2405_v29 = vpop.eup %2404  ;;  %v963_v30 = vpop.f32.mrf.mxu1 }
 0x152   : > { %v1033_v31 = vpop.f32.mrf.mxu0  ;;  %v724_v33 = vadd.f32 1.0, %v2405_v29 }
 0x153   : > { %v1034_v34 = vadd.f32 %v1033_v31, %v963_v30  ;;  %v2175_v35 = vpop.f32.mrf.mxu1 }
 0x154   : > { %v2182_v36 = vpop.f32.mrf.mxu0  ;;  %2410 = vrcp.f32 %v724_v33  ;;  %v1979_v35 = vld [vmem:[%s3053_s6 + $0x3] ss:$0 sm:$0xff] }
 0x155   : > { %v1045_v37 = vadd.f32 %v1961_v32, %v1034_v34 }
 0x157   : > { %v1962_v38 = vmul.f32 -1.442695, %v1045_v37 }
 0x159   : > { %2412 = vpow2.f32 %v1962_v38 }
 0x15b   : > { %v2407_v39 = vpop.eup %2406 }
 0x15d   : > { %v2409_v41 = vpop.eup %2408 }
 0x15e   : > { %v1053_v44 = vmul.f32 %v2409_v41, %v2407_v39  ;;  %v1061_v41 = vld [vmem:[#allocation5] sm:$0xf] }
 0x15f   : > { %v1143_v6 = vpop.f32.mrf.mxu0 }
 0x161   : > { %v2411_v42 = vpop.eup %2410  ;;  %v2197_v7 = vpop.f32.mrf.mxu0 }
 0x162   : > { %v1052_v43 = vmul.f32 %v2411_v42, %v391_v40 }
 0x164   : > { %v1054_v45 = vadd.f32 %v1053_v44, %v1052_v43 }
 0x166   : > { %v2413_v46 = vpop.eup %2412  ;;  %2414 = vtanh.f32 %v1054_v45  ;;  %1059 = vst.msk [vmem:[#allocation3] sm:$0xf] %vm1057_vm4, %v1054_v45 }
 0x167   : > { %v1049_v47 = vadd.f32 1.0, %v2413_v46 }
 0x169   : > { %2416 = vrcp.f32 %v1049_v47 }
 0x16b   : > { %v1314_v8 = vpop.f32.mrf.mxu0 }
 0x16d   : > { %v2227_v9 = vpop.f32.mrf.mxu0 }
 0x173   : > { %v2415_v48 = vpop.eup %2414 }
 0x176   : > { %v2417_v49 = vpop.eup %2416 }
 0x177   : > { %v1056_v50 = vmul.f32 %v2417_v49, %v2415_v48  ;;  %v1483_v10 = vpop.f32.mrf.mxu0 }
 0x179   : > { %1058 = vst.msk [vmem:[#allocation2] sm:$0xf] %vm1057_vm4, %v1056_v50  ;;  %2211 = vmatmul.mubr.msk.f32.vlgmr.msra.gmra.mxu1 %vm400_vm3, %v1056_v50  ;;  %v2257_v11 = vpop.f32.mrf.mxu0 }
 0x17a   : > { %2229 = vmatpush3.msra.mxu1 %v1240_v51  ;;  %2240 = vmatprep.mubr.msk.f32.mxu1 %vm2620_vm2, %v2619_v3 }
 0x17b   : > { %2230 = vmatprep.subr.mxu1 %v2619_v3 }
 0x17c   : > { %2231 = vmatpush3.msra.mxu1 %v1239_v52 }
 0x17d   : > { %2232 = vmatprep.subr.mxu1 %v2619_v3 }
 0x17e   : > { %2233 = vmatpush3.msra.mxu1 %v1238_v53 }
 0x17f   : > { %2234 = vmatprep.subr.mxu1 %v2619_v3 }
 0x180   : > { %2235 = vmatpush3.msra.mxu1 %v1237_v54 }
 0x181   : > { %2236 = vmatprep.subr.mxu1 %v2619_v3 }
 0x182   : > { %2237 = vmatpush3.msra.mxu1 %v1236_v55 }
 0x183   : > { %2238 = vmatprep.subr.mxu1 %v2619_v3  ;;  %v1647_v12 = vpop.f32.mrf.mxu0 }
 0x184   : > { %2239 = vmatpush3.msra.mxu1 %v1235_v56 }
 0x185   : > { %2241 = vmatmul.mubr.msk.f32.vlgmr.msra.gmra.mxu1 %vm400_vm3, %v1056_v50  ;;  %2258 = vmatprep.subr.mxu1 %v2619_v3  ;;  %v2287_v13 = vpop.f32.mrf.mxu0 }
 0x186   : > { %2259 = vmatpush3.msra.mxu1 %v1409_v57  ;;  %2270 = vmatprep.mubr.msk.f32.mxu1 %vm2620_vm2, %v2619_v3 }
 0x187   : > { %2260 = vmatprep.subr.mxu1 %v2619_v3 }
 0x188   : > { %2261 = vmatpush3.msra.mxu1 %v1408_v58 }
 0x189   : > { %2262 = vmatprep.subr.mxu1 %v2619_v3 }
 0x18a   : > { %2263 = vmatpush3.msra.mxu1 %v1407_v59 }
 0x18b   : > { %2264 = vmatprep.subr.mxu1 %v2619_v3 }
 0x18c   : > { %2265 = vmatpush3.msra.mxu1 %v1406_v60 }
 0x18d   : > { %2266 = vmatprep.subr.mxu1 %v2619_v3 }
 0x18e   : > { %2267 = vmatpush3.msra.mxu1 %v1405_v61 }
 0x18f   : > { %2268 = vmatprep.subr.mxu1 %v2619_v3 }
 0x190   : > { %2269 = vmatpush3.msra.mxu1 %v1404_v62 }
 0x191   : > { %2271 = vmatmul.mubr.msk.f32.vlgmr.msra.gmra.mxu1 %vm400_vm3, %v1056_v50  ;;  %2288 = vmatprep.subr.mxu1 %v2619_v3 }
 0x192   : > { %2289 = vmatpush3.msra.mxu1 %v1573_v63  ;;  %2300 = vmatprep.mubr.msk.f32.mxu1 %vm2620_vm2, %v2619_v3 }
 0x193   : > { %2290 = vmatprep.subr.mxu1 %v2619_v3 }
 0x194   : > { %2291 = vmatpush3.msra.mxu1 %v1572_v0 }
 0x195   : > { %2292 = vmatprep.subr.mxu1 %v2619_v3 }
 0x196   : > { %2293 = vmatpush3.msra.mxu1 %v1571_v1 }
 0x197   : > { %2294 = vmatprep.subr.mxu1 %v2619_v3 }
 0x198   : > { %2295 = vmatpush3.msra.mxu1 %v1570_v2 }
 0x199   : > { %2296 = vmatprep.subr.mxu1 %v2619_v3 }
 0x19a   : > { %2297 = vmatpush3.msra.mxu1 %v1569_v4 }
 0x19b   : > { %2298 = vmatprep.subr.mxu1 %v2619_v3 }
 0x19c   : > { %2299 = vmatpush3.msra.mxu1 %v1568_v5 }
 0x19d   : > { %2301 = vmatmul.mubr.msk.f32.vlgmr.msra.gmra.mxu1 %vm400_vm3, %v1056_v50 }
 0x239   : > { %v1216_v14 = vpop.f32.mrf.mxu1 }
 0x23a   : > { %v1217_v15 = vadd.f32 %v1216_v14, %v1143_v6 }
 0x23b   : > { %v2212_v16 = vpop.f32.mrf.mxu1 }
 0x23c   : > { %v1227_v18 = vadd.f32 %v1965_v17, %v1217_v15 }
 0x23e   : > { %v1966_v3 = vmul.f32 -1.442695, %v1227_v18 }
 0x240   : > { %2418 = vpow2.f32 %v1966_v3 }
 0x245   : > { %v1384_v19 = vpop.f32.mrf.mxu1 }
 0x246   : > { %v1385_v21 = vadd.f32 %v1384_v19, %v1314_v8 }
 0x247   : > { %v2242_v22 = vpop.f32.mrf.mxu1 }
 0x248   : > { %v1396_v23 = vadd.f32 %v1970_v20, %v1385_v21 }
 0x24a   : > { %v1971_v24 = vmul.f32 -1.442695, %v1396_v23 }
 0x24c   : > { %2420 = vpow2.f32 %v1971_v24 }
 0x24d   : > { %v2419_v29 = vpop.eup %2418 }
 0x24e   : > { %v1231_v31 = vadd.f32 1.0, %v2419_v29 }
 0x251   : > { %v1553_v25 = vpop.f32.mrf.mxu1 }
 0x252   : > { %v1554_v26 = vadd.f32 %v1553_v25, %v1483_v10 }
 0x253   : > { %v2272_v28 = vpop.f32.mrf.mxu1 }
 0x254   : > { %v1565_v30 = vadd.f32 %v1975_v27, %v1554_v26 }
 0x256   : > { %2422 = vtanh.f32 %v1565_v30 }
 0x257   : > { %2424 = vrcp.f32 %v1231_v31 }
 0x259   : > { %v2421_v32 = vpop.eup %2420 }
 0x25a   : > { %v1400_v33 = vadd.f32 1.0, %v2421_v32 }
 0x25c   : > { %2426 = vrcp.f32 %v1400_v33 }
 0x25d   : > { %v1717_v34 = vpop.f32.mrf.mxu1 }
 0x25e   : > { %v1718_v36 = vadd.f32 %v1717_v34, %v1647_v12 }
 0x25f   : > { %v2302_v37 = vpop.f32.mrf.mxu1 }
 0x260   : > { %v1729_v38 = vadd.f32 %v1979_v35, %v1718_v36 }
 0x262   : > { %v1980_v39 = vmul.f32 -1.442695, %v1729_v38 }
 0x263   : > { %v2423_v40 = vpop.eup %2422 }
 0x264   : > { %2428 = vpow2.f32 %v1980_v39  ;;  %v2425_v42 = vpop.eup %2424 }
 0x265   : > { %v1737_v45 = vmul.f32 %v2425_v42, %v2423_v40 }
 0x269   : > { %v2427_v43 = vpop.eup %2426 }
 0x26a   : > { %v1736_v44 = vmul.f32 %v2427_v43, %v1061_v41 }
 0x26c   : > { %v1738_v46 = vadd.f32 %v1737_v45, %v1736_v44 }
 0x26e   : > { %1742 = vst.msk [vmem:[#allocation5] sm:$0xf] %vm1057_vm4, %v1738_v46  ;;  %2430 = vtanh.f32 %v1738_v46 }
 0x271   : > { %v2429_v47 = vpop.eup %2428 }
 0x272   : > { %v1733_v48 = vadd.f32 1.0, %v2429_v47 }
 0x274   : > { %2432 = vrcp.f32 %v1733_v48 }
 0x27b   : > { %v2431_v49 = vpop.eup %2430 }
 0x281   : > { %v2433_v50 = vpop.eup %2432  ;;  %1749 = sbr.rel (%p1982_p4) target bundleno = 855 (0x357), region = 80 }
 0x282   : > { %v1740_v51 = vmul.f32 %v2433_v50, %v2431_v49 }
 0x284   : > { %1741 = vst.msk [vmem:[#allocation4] sm:$0xf] %vm1057_vm4, %v1740_v51 }
 0x285   : > { %1991 = vst.msk [vmem:[%s1989_s2 - $0x4] sm:$0x8] %vm1744_vm5, %v1740_v51 }
 0x286   : > { %v1756_v52 = vld [vmem:[%s3054_s7 + $0x28] sm:$0xff]  ;;  %v2621_v53 = vmov 0.0   ;;  %v1755_v54 = vld [vmem:[%s3054_s7 + $0x20] sm:$0xff]  ;;  %vm2622_vm6 = vmmov 0   ;;  %v1754_v55 = vld [vmem:[%s3054_s7 + $0x18] sm:$0xff] }
 0x287   : > { %2303 = vmatprep.subr.mxu0 %v2621_v53  ;;  %2315 = vmatprep.mubr.msk.f32.mxu0 %vm2622_vm6, %v2621_v53  ;;  %v1753_v56 = vld [vmem:[%s3054_s7 + $0x10] sm:$0xff]  ;;  %v1752_v57 = vld [vmem:[%s3054_s7 + $0x8] sm:$0xff]  ;;  %v1751_v58 = vld [vmem:[%s3054_s7] sm:$0xff] }
 0x288   : > { %2304 = vmatpush3.msra.mxu0 %v1756_v52  ;;  %v1983_v60 = vld [vmem:[%s3055_s8] ss:$0 sm:$0xff] }
 0x289   : > { %2305 = vmatprep.subr.mxu0 %v2621_v53 }
 0x28a   : > { %2306 = vmatpush3.msra.mxu0 %v1755_v54 }
 0x28b   : > { %2307 = vmatprep.subr.mxu0 %v2621_v53 }
 0x28c   : > { %2308 = vmatpush3.msra.mxu0 %v1754_v55  ;;  %v1750_v59 = vld [vmem:[#allocation6] sm:$0xff] }
 0x28d   : > { %2309 = vmatprep.subr.mxu0 %v2621_v53 }
 0x28e   : > { %2310 = vmatpush3.msra.mxu0 %v1753_v56 }
 0x28f   : > { %2311 = vmatprep.subr.mxu0 %v2621_v53 }
 0x290   : > { %2312 = vmatpush3.msra.mxu0 %v1752_v57 }
 0x291   : > { %2313 = vmatprep.subr.mxu0 %v2621_v53 }
 0x292   : > { %2314 = vmatpush3.msra.mxu0 %v1751_v58 }
 0x293   : > { %2316 = vmatmul.mubr.msk.f32.vlgmr.msra.gmra.mxu0 %vm400_vm3, %v1750_v59 }
 0x353   : > { %v1833_v61 = vpop.f32.mrf.mxu0 }
 0x354   : > { %v1834_v62 = vadd.f32 %v1983_v60, %v1833_v61 }
 0x355   : > { %v2317_v63 = vpop.f32.mrf.mxu0 }
 0x356   : > { %1837 = vst.msk [vmem:[#allocation15] sm:$0xff] %vm474_vm1, %v1834_v62 }
 0x357 PF: > { %p2357_p5 = scmp.eq.s32.totalorder %s2693_s13, 7  ;;  %s2623_s23 = smov [#allocation15]  }
 0x358   : > { %s1845_s28 = sshll.u32 %s2623_s23, 4  ;;  %s1846_s28 = int_to_ptr.vmem [resolvable:$true] %s1845_s28 }
 0x359   : > { %s2540_s2 = scalar_lea.vmem %s1846_s28, 128  ;;  %p2547_p12 = scmp.lt.s32.totalorder %s1846_s28, %s1846_s28 }
 0x35a   : > { %p2541_p9 = scmp.ne.s32.totalorder %s1846_s28, %s2540_s2  ;;  %p2548_p2 = scmp.lt.s32.totalorder %s2540_s2, %s2540_s2 }
 0x35c   : > { %p2542_p11 = pnand %p2541_p9, %p2357_p5  ;;  %p2549_p3 = por %p2548_p2, %p2547_p12 }
 0x35e   : > { %p2543_p13 = pneg %p2542_p11 }
 0x360   : > { %p2550_p0 = pnand %p2549_p3, %p2543_p13 }
 0x362   : > { %2553 = shalt.err (!%p2550_p0)
}
 0x363   : > { %2333 = dma.vmem_to_hbm [thread:$0]  (%p2357_p5), %s1846_s28, 128, %s3056_s9, [#allocation9]  }
 0x364   : > { %2593 = dma.done.wait (%p2357_p5), [#allocation9], 128  }
 0x365   : > { %2595 = vsyncadd (%p2357_p5), [#allocation9], 4294967168 }
 0x366 PF: > { %p22_p6 = scmp.ge.s32.totalorder %s2745_s20, 10   ;;  %s3073_s30 = smov %s2602_s10 }
 0x367   : > { %s3074_s10 = smov %s2606_s11  ;;  %s3075_s11 = smov %s2755_s18 }
 0x368   : > { %s3076_s12 = smov %s2745_s20  ;;  %24 = sbr.rel (!%p22_p6) target bundleno = 8 (0x8), region = 132 }
 0x36d   :  { %1858 = vsyncpa [#allocation8], 1 }
 0x36e   :  { %1860 = vsyncpa [#allocation8 + $0x1], 1 }
 0x36f   :  { %1861 = vsyncpa [#allocation11], 1 }
 0x370   :  { %1862 = vsyncpa [#allocation14], 1 }
 0x371   :  { %1863 = vsyncpa [#allocation9], 1 }
 0x372   :  { %1865 = vsyncpa [#allocation9 + $0x1], 1 }

</bundles_post_ra>
